<compile_context>
chip_gen: v7x
topology: tpu7x:2x2x1
jax: 0.10.0
libtpu: 0.0.40
codegen_flags: <defaults>
</compile_context>

<pallas_src>
import math
from typing import NamedTuple

import numpy as np
import jax
import jax.numpy as jnp
from jax.experimental import pallas as pl
from jax.experimental.pallas import tpu as pltpu


FEA_IN = 1922    # fea_layer input dim fixed by the reference module
FEA_OUT = 256    # fea_layer output dim


def _round_up(x, m):
    return ((x + m - 1) // m) * m


class ACNNMeta(NamedTuple):
    """Static (hashable) layout metadata derived from the parameters."""
    num_tasks: int    # O   (31)
    t_pad: int        # per-atom task block width after padding (32)
    n_blocks: int     # atom positions per complex in `fea` (62)
    n_blk_pad: int    # padded block count so fea width is a multiple of 128 (64)


# -----------------------------------------------------------------------------
# Fused kernel:
#   0) start the fea_layer weight DMA (overlaps with everything below),
#   1) shared projection MLP on the stacked ligand|protein|complex rows,
#   2) vectorized one-hot gather (VPU iota/compare + one MXU matmul),
#   3) static placement loop into the padded (b_pad, 2048) `fea` layout,
#   4) fea_layer Linear(1922 -> 256) against the just-arrived weight tile.
# -----------------------------------------------------------------------------
def _make_fused_kernel(n_linear, batch_size, n_blocks, t_pad):
    def kernel(*refs):
        x_ref = refs[0]                          # (r_pad, F) f32 stacked features
        proj = refs[1:1 + 2 * n_linear]          # alternating (w bf16, b f32)
        src_ref = refs[1 + 2 * n_linear]         # (g_rows_pad, 1) int32 source rows
        fw_hbm = refs[2 + 2 * n_linear]          # (2048, 256) bf16, stays in HBM
        fb_ref = refs[3 + 2 * n_linear]          # (1, 256) f32
        o_ref = refs[4 + 2 * n_linear]           # (b_pad, 256) f32
        gath_ref = refs[5 + 2 * n_linear]        # scratch (g_rows_pad, t_pad) f32
        fea_ref = refs[6 + 2 * n_linear]         # scratch (b_pad, 2048) f32
        w_vmem = refs[7 + 2 * n_linear]          # scratch (2048, 256) bf16
        dma_sem = refs[8 + 2 * n_linear]         # DMA semaphore (1,)

        # ---- (0) kick off the ~1 MiB fea_layer weight DMA now --------------------
        w_copy = pltpu.make_async_copy(fw_hbm, w_vmem, dma_sem.at[0])
        w_copy.start()

        # ---- (1) projection MLP (one 128-row MXU tile, bf16 in / f32 accumulate) --
        h = x_ref[...].astype(jnp.bfloat16)
        for i in range(n_linear):
            w = proj[2 * i][...]                 # bf16
            b = proj[2 * i + 1][...]             # (1, out) f32
            h = jnp.dot(h, w, preferred_element_type=jnp.float32) + b
            if i < n_linear - 1:
                # bias-add + ReLU fused (Dropout == identity in eval mode)
                h = jnp.maximum(h, 0.0).astype(jnp.bfloat16)
        feats = h                                # (r_pad, t_pad) f32 per-atom tasks

        # ---- (2) vectorized gather: one-hot (VPU) + single MXU matmul -------------
        # gathered[p*B + b, t] = feats[src[b, p], t]; f32 one-hot keeps it exact and
        # out-of-range indices yield an all-zero row (no OOB VMEM reads possible).
        g_rows = gath_ref.shape[0]
        r_pad = feats.shape[0]
        row_ids = jax.lax.broadcasted_iota(jnp.int32, (g_rows, r_pad), 1)
        onehot = jnp.where(src_ref[...] == row_ids, 1.0, 0.0)          # (g_rows, r_pad)
        gath_ref[...] = jnp.dot(onehot, feats,
                                preferred_element_type=jnp.float32)    # (g_rows, t_pad)

        # ---- (3) place 32-lane task blocks into the padded `fea` rows -------------
        # Static indices only: contiguous 2-sublane loads + static-offset stores;
        # padding blocks/rows stay zero (matching fea_w rows are zero as well).
        fea_ref[...] = jnp.zeros_like(fea_ref)
        for p in range(n_blocks):
            fea_ref[:batch_size, p * t_pad:(p + 1) * t_pad] = (
                gath_ref[p * batch_size:(p + 1) * batch_size, :])

        # ---- (4) fea_layer: Linear(1922 -> 256) on the zero-padded 2048 layout ----
        w_copy.wait()                            # weight DMA hidden behind (1)-(3)
        out = jnp.dot(fea_ref[...].astype(jnp.bfloat16), w_vmem[...],
                      preferred_element_type=jnp.float32) + fb_ref[...]
        o_ref[...] = out                         # full (b_pad, 256) unmasked store
    return kernel


# -----------------------------------------------------------------------------
# Parameter initialization (mirrors the PyTorch __init__; weights stored as
# (in, out) so the kernels compute X @ W + b directly).
# -----------------------------------------------------------------------------
def init_acnn_predictor_params(key, in_size, hidden_sizes, weight_init_stddevs,
                               features_to_use, num_tasks):
    if features_to_use is not None:
        in_size = in_size * len(features_to_use)
    sizes = [in_size] + list(hidden_sizes) + [num_tasks]
    n_layers = len(sizes) - 1
    keys = jax.random.split(key, 2 * n_layers + 2)
    proj_ws, proj_bs = [], []
    for i in range(n_layers):
        std = weight_init_stddevs[i] if i < len(weight_init_stddevs) else weight_init_stddevs[-1]
        fan_in = sizes[i]
        w = std * jax.random.truncated_normal(
            keys[2 * i], -2.0, 2.0, (sizes[i], sizes[i + 1]), jnp.float32)
        b = jax.random.uniform(keys[2 * i + 1], (sizes[i + 1],), jnp.float32,
                               minval=-1.0 / np.sqrt(fan_in), maxval=1.0 / np.sqrt(fan_in))
        proj_ws.append(w)
        proj_bs.append(b)

    bound = 1.0 / np.sqrt(FEA_IN)
    fea_w = jax.random.uniform(keys[-2], (FEA_IN, FEA_OUT), jnp.float32,
                               minval=-bound, maxval=bound)
    fea_b = jax.random.uniform(keys[-1], (FEA_OUT,), jnp.float32,
                               minval=-bound, maxval=bound)
    return dict(proj_ws=proj_ws, proj_bs=proj_bs, fea_w=fea_w, fea_b=fea_b)


def prepare_acnn_kernel_params(params):
    """One-time conversion of the f32 parameters into the kernel layout.

    bf16 weights (intentional: halves the dominant fea_layer weight DMA); the
    last projection layer's output padded num_tasks -> t_pad; fea_w re-tiled
    (62 x 31 x 256) -> zero-padded (64 x 32 x 256) -> (2048, 256) so it lines
    up with the padded in-kernel `fea` buffer.
    """
    proj_ws_f32, proj_bs_f32 = params["proj_ws"], params["proj_bs"]
    num_tasks = int(proj_ws_f32[-1].shape[1])
    t_pad = _round_up(num_tasks, 32)

    proj_ws = [w.astype(jnp.bfloat16) for w in proj_ws_f32[:-1]]
    proj_bs = [b.reshape(1, -1).astype(jnp.float32) for b in proj_bs_f32[:-1]]
    proj_ws.append(jnp.pad(proj_ws_f32[-1],
                           ((0, 0), (0, t_pad - num_tasks))).astype(jnp.bfloat16))
    proj_bs.append(jnp.pad(proj_bs_f32[-1],
                           (0, t_pad - num_tasks)).reshape(1, -1).astype(jnp.float32))

    fea_w = params["fea_w"]
    fea_in, fea_out = fea_w.shape
    if fea_in % num_tasks != 0:
        raise ValueError("fea_layer input dim must be a multiple of num_tasks")
    n_blocks = fea_in // num_tasks
    blk_mult = 128 // math.gcd(t_pad, 128)
    n_blk_pad = _round_up(n_blocks, blk_mult)

    wb = fea_w.reshape(n_blocks, num_tasks, fea_out)
    wb = jnp.pad(wb, ((0, n_blk_pad - n_blocks), (0, t_pad - num_tasks), (0, 0)))
    fea_w_pad = wb.reshape(n_blk_pad * t_pad, fea_out).astype(jnp.bfloat16)
    fea_b = params["fea_b"].reshape(1, -1).astype(jnp.float32)

    kparams = dict(proj_ws=proj_ws, proj_bs=proj_bs,
                   fea_w_pad=fea_w_pad, fea_b=fea_b)
    meta = ACNNMeta(num_tasks=num_tasks, t_pad=t_pad,
                    n_blocks=n_blocks, n_blk_pad=n_blk_pad)
    return kparams, meta


# -----------------------------------------------------------------------------
# Forward pass (mirrors ACNNPredictor.forward) — one fused, grid-less pallas_call.
# -----------------------------------------------------------------------------
def acnn_predictor_forward(kparams, meta, batch_size,
                           frag1_node_indices_in_complex,
                           frag2_node_indices_in_complex,
                           ligand_conv_out, protein_conv_out, complex_conv_out):
    B = int(batch_size)
    V2, _ = ligand_conv_out.shape
    V1 = protein_conv_out.shape[0]
    Vc = complex_conv_out.shape[0]
    if Vc != V1 + V2:
        raise ValueError("complex_conv_out must have V1 + V2 rows")
    if V1 % B != 0 or V2 % B != 0:
        raise ValueError("V1 and V2 must be divisible by batch_size")
    L1, L2 = V1 // B, V2 // B
    if 2 * (L1 + L2) != meta.n_blocks:
        raise ValueError(
            "batch composition inconsistent with fea_layer input dim: "
            f"got {2 * (L1 + L2) * meta.num_tasks}, expected {meta.n_blocks * meta.num_tasks}")
    if (frag1_node_indices_in_complex.shape[0] != V1
            or frag2_node_indices_in_complex.shape[0] != V2):
        raise ValueError("frag index arrays must have V1 / V2 entries")

    # ---- stack ligand | protein | complex into one MXU row tile (pad -> 8k rows) --
    n_rows = V2 + V1 + Vc
    r_pad = _round_up(n_rows, 8)
    x = jnp.concatenate([ligand_conv_out, protein_conv_out, complex_conv_out], axis=0)
    x = jnp.pad(x, ((0, r_pad - n_rows), (0, 0)))

    # ---- (batch, block) -> stacked-row source map for the in-kernel gather --------
    # fea[b] layout: ligand | protein | complex[frag1] | complex[frag2]
    frag1 = frag1_node_indices_in_complex.astype(jnp.int32).reshape(B, L1)
    frag2 = frag2_node_indices_in_complex.astype(jnp.int32).reshape(B, L2)
    b_col = jnp.arange(B, dtype=jnp.int32)[:, None]
    lig_src = b_col * L2 + jnp.arange(L2, dtype=jnp.int32)[None, :]
    pro_src = V2 + b_col * L1 + jnp.arange(L1, dtype=jnp.int32)[None, :]
    cl_src = V2 + V1 + frag1          # complex rows feeding "complex_ligand_energy"
    cp_src = V2 + V1 + frag2          # complex rows feeding "complex_protein_energy"
    src = jnp.concatenate([lig_src, pro_src, cl_src, cp_src], axis=1)   # (B, 62)

    # p-major flattened source column: src_col[p * B + b] = src[b, p]
    g_rows = B * meta.n_blocks
    g_rows_pad = _round_up(g_rows, 8)
    src_col = jnp.pad(src.T.reshape(-1), (0, g_rows_pad - g_rows))
    src_col = src_col.reshape(g_rows_pad, 1).astype(jnp.int32)

    proj_ws, proj_bs = kparams["proj_ws"], kparams["proj_bs"]
    n_linear = len(proj_ws)
    fea_width = meta.n_blk_pad * meta.t_pad
    fea_out = kparams["fea_w_pad"].shape[1]
    b_pad = _round_up(B, 8)

    operands = [x]
    for w, b in zip(proj_ws, proj_bs):
        operands += [w, b]
    operands += [src_col, kparams["fea_w_pad"], kparams["fea_b"]]

    vmem = pltpu.MemorySpace.VMEM
    in_specs = ([pl.BlockSpec(memory_space=vmem)] * (1 + 2 * n_linear)
                + [pl.BlockSpec(memory_space=vmem),      # src_col
                   pl.BlockSpec(memory_space=pl.ANY),    # fea_w stays in HBM (manual DMA)
                   pl.BlockSpec(memory_space=vmem)])     # fea_b

    kernel = _make_fused_kernel(n_linear, B, meta.n_blocks, meta.t_pad)
    out_pad = pl.pallas_call(
        kernel,
        out_shape=jax.ShapeDtypeStruct((b_pad, fea_out), jnp.float32),
        in_specs=in_specs,
        out_specs=pl.BlockSpec(memory_space=vmem),
        scratch_shapes=[
            pltpu.VMEM((g_rows_pad, meta.t_pad), jnp.float32),   # gathered task vectors
            pltpu.VMEM((b_pad, fea_width), jnp.float32),         # padded fea rows
            pltpu.VMEM((fea_width, fea_out), jnp.bfloat16),      # fea_layer weight buffer
            pltpu.SemaphoreType.DMA((1,)),                       # weight-DMA semaphore
        ],
    )(*operands)
    return out_pad[:B]


# -----------------------------------------------------------------------------
# Pure-JAX reference (f32) for correctness checking.
# -----------------------------------------------------------------------------
def acnn_predictor_reference(params, batch_size, frag1, frag2, ligand, protein, cplx):
    def project(h):
        ws, bs = params["proj_ws"], params["proj_bs"]
        for i, (w, b) in enumerate(zip(ws, bs)):
            h = h @ w + b
            if i < len(ws) - 1:
                h = jnp.maximum(h, 0.0)
        return h

    ligand_feats = project(ligand)
    protein_feats = project(protein)
    complex_feats = project(cplx)
    ligand_energy = ligand_feats.reshape(batch_size, -1)
    protein_energy = protein_feats.reshape(batch_size, -1)
    complex_ligand_energy = complex_feats[frag1].reshape(batch_size, -1)
    complex_protein_energy = complex_feats[frag2].reshape(batch_size, -1)
    complex_energy = jnp.concatenate(
        [complex_ligand_energy, complex_protein_energy], axis=-1)
    fea = jnp.concatenate([ligand_energy, protein_energy, complex_energy], axis=-1)
    return fea @ params["fea_w"] + params["fea_b"]


# -----------------------------------------------------------------------------
# Demo
# -----------------------------------------------------------------------------
if __name__ == "__main__":
    key = jax.random.PRNGKey(0)

    K = 4                                   # radial filters
    features_to_use = list(range(8))        # T = 8 atom types -> in_size = 32
    hidden_sizes = [32, 16]
    weight_init_stddevs = [0.125, 0.25, 0.5]
    num_tasks = 31

    B = 2          # batch size
    V1 = 32        # protein atoms (16 per complex)
    V2 = 30        # ligand atoms  (15 per complex)
    feat_dim = K * len(features_to_use)

    k_par, k_lig, k_pro, k_cpx, k_perm = jax.random.split(key, 5)
    params = init_acnn_predictor_params(
        k_par, K, hidden_sizes, weight_init_stddevs, features_to_use, num_tasks)
    kparams, meta = prepare_acnn_kernel_params(params)

    ligand_conv_out = jax.random.normal(k_lig, (V2, feat_dim), jnp.float32)
    protein_conv_out = jax.random.normal(k_pro, (V1, feat_dim), jnp.float32)
    complex_conv_out = jax.random.normal(k_cpx, (V1 + V2, feat_dim), jnp.float32)

    perm = jax.random.permutation(k_perm, V1 + V2)
    frag1_node_indices_in_complex = perm[:V1].astype(jnp.int32)   # V1 indices
    frag2_node_indices_in_complex = perm[V1:].astype(jnp.int32)   # V2 indices

    fwd = jax.jit(acnn_predictor_forward, static_argnums=(1, 2))
    out = fwd(kparams, meta, B,
              frag1_node_indices_in_complex, frag2_node_indices_in_complex,
              ligand_conv_out, protein_conv_out, complex_conv_out)
    out = jax.block_until_ready(out)

    assert out.shape == (B, 256) and out.dtype == jnp.float32
    assert bool(jnp.all(jnp.isfinite(out)))

    ref = acnn_predictor_reference(
        params, B, frag1_node_indices_in_complex, frag2_node_indices_in_complex,
        ligand_conv_out, protein_conv_out, complex_conv_out)
    np.testing.assert_allclose(np.asarray(out), np.asarray(ref), rtol=5e-2, atol=5e-2)

    print("KERNEL_OK")
</pallas_src>

<mosaic_0001>
module attributes {stable_mosaic.version = 11 : i64} {
  func.func @kernel(%arg0: memref<128x32xf32, #tpu.memory_space<vmem>>, %arg1: memref<32x32xbf16, #tpu.memory_space<vmem>>, %arg2: memref<1x32xf32, #tpu.memory_space<vmem>>, %arg3: memref<32x16xbf16, #tpu.memory_space<vmem>>, %arg4: memref<1x16xf32, #tpu.memory_space<vmem>>, %arg5: memref<16x32xbf16, #tpu.memory_space<vmem>>, %arg6: memref<1x32xf32, #tpu.memory_space<vmem>>, %arg7: memref<128x1xi32, #tpu.memory_space<vmem>>, %arg8: memref<2048x256xbf16, #tpu.memory_space<any>>, %arg9: memref<1x256xf32, #tpu.memory_space<vmem>>, %arg10: memref<8x256xf32, #tpu.memory_space<vmem>>, %arg11: memref<128x32xf32, #tpu.memory_space<vmem>>, %arg12: memref<8x2048xf32, #tpu.memory_space<vmem>>, %arg13: memref<2048x256xbf16, #tpu.memory_space<vmem>>, %arg14: memref<1x!tpu.dma_semaphore, #tpu.memory_space<semaphore_mem>>) attributes {dimension_semantics = [], scalar_prefetch = 0 : i64, scratch_operands = 4 : i64, tpu.core_type = #tpu.core_type<tc>} {
    %c0_i32 = arith.constant 0 : i32
    %0 = tpu.memref_slice %arg14[%c0_i32] : memref<1x!tpu.dma_semaphore, #tpu.memory_space<semaphore_mem>> -> memref<1x!tpu.dma_semaphore, #tpu.memory_space<semaphore_mem>>
    %1 = tpu.memref_squeeze %0 : memref<1x!tpu.dma_semaphore, #tpu.memory_space<semaphore_mem>> -> memref<!tpu.dma_semaphore, #tpu.memory_space<semaphore_mem>>
    tpu.enqueue_dma source(%arg8 : memref<2048x256xbf16, #tpu.memory_space<any>>) target(%arg13 : memref<2048x256xbf16, #tpu.memory_space<vmem>>) target_semaphore(%1 : memref<!tpu.dma_semaphore, #tpu.memory_space<semaphore_mem>>)
    %c0 = arith.constant 0 : index
    %c0_0 = arith.constant 0 : index
    %2 = vector.load %arg0[%c0, %c0_0] : memref<128x32xf32, #tpu.memory_space<vmem>>, vector<128x32xf32>
    %3 = arith.truncf %2 : vector<128x32xf32> to vector<128x32xbf16>
    %c0_1 = arith.constant 0 : index
    %c0_2 = arith.constant 0 : index
    %4 = vector.load %arg1[%c0_1, %c0_2] : memref<32x32xbf16, #tpu.memory_space<vmem>>, vector<32x32xbf16>
    %c0_3 = arith.constant 0 : index
    %c0_4 = arith.constant 0 : index
    %5 = vector.load %arg2[%c0_3, %c0_4] : memref<1x32xf32, #tpu.memory_space<vmem>>, vector<1x32xf32>
    %cst = arith.constant dense<0.000000e+00> : vector<128x32xf32>
    %6 = tpu.matmul %3, %4, %cst {dimension_numbers = #tpu.dot_dimension_numbers<[1], [0], [0], [1], [0, 0, 1, 1], [], []>} : vector<128x32xbf16>, vector<32x32xbf16>, vector<128x32xf32> -> vector<128x32xf32>
    %7 = vector.broadcast %5 : vector<1x32xf32> to vector<128x32xf32>
    %8 = arith.addf %6, %7 : vector<128x32xf32>
    %cst_5 = arith.constant 0.000000e+00 : f32
    %9 = vector.broadcast %cst_5 : f32 to vector<128x32xf32>
    %10 = arith.maximumf %8, %9 : vector<128x32xf32>
    %11 = arith.truncf %10 : vector<128x32xf32> to vector<128x32xbf16>
    %c0_6 = arith.constant 0 : index
    %c0_7 = arith.constant 0 : index
    %12 = vector.load %arg3[%c0_6, %c0_7] : memref<32x16xbf16, #tpu.memory_space<vmem>>, vector<32x16xbf16>
    %c0_8 = arith.constant 0 : index
    %c0_9 = arith.constant 0 : index
    %13 = vector.load %arg4[%c0_8, %c0_9] : memref<1x16xf32, #tpu.memory_space<vmem>>, vector<1x16xf32>
    %cst_10 = arith.constant dense<0.000000e+00> : vector<128x16xf32>
    %14 = tpu.matmul %11, %12, %cst_10 {dimension_numbers = #tpu.dot_dimension_numbers<[1], [0], [0], [1], [0, 0, 1, 1], [], []>} : vector<128x32xbf16>, vector<32x16xbf16>, vector<128x16xf32> -> vector<128x16xf32>
    %15 = vector.broadcast %13 : vector<1x16xf32> to vector<128x16xf32>
    %16 = arith.addf %14, %15 : vector<128x16xf32>
    %cst_11 = arith.constant 0.000000e+00 : f32
    %17 = vector.broadcast %cst_11 : f32 to vector<128x16xf32>
    %18 = arith.maximumf %16, %17 : vector<128x16xf32>
    %19 = arith.truncf %18 : vector<128x16xf32> to vector<128x16xbf16>
    %c0_12 = arith.constant 0 : index
    %c0_13 = arith.constant 0 : index
    %20 = vector.load %arg5[%c0_12, %c0_13] : memref<16x32xbf16, #tpu.memory_space<vmem>>, vector<16x32xbf16>
    %c0_14 = arith.constant 0 : index
    %c0_15 = arith.constant 0 : index
    %21 = vector.load %arg6[%c0_14, %c0_15] : memref<1x32xf32, #tpu.memory_space<vmem>>, vector<1x32xf32>
    %cst_16 = arith.constant dense<0.000000e+00> : vector<128x32xf32>
    %22 = tpu.matmul %19, %20, %cst_16 {dimension_numbers = #tpu.dot_dimension_numbers<[1], [0], [0], [1], [0, 0, 1, 1], [], []>} : vector<128x16xbf16>, vector<16x32xbf16>, vector<128x32xf32> -> vector<128x32xf32>
    %23 = vector.broadcast %21 : vector<1x32xf32> to vector<128x32xf32>
    %24 = arith.addf %22, %23 : vector<128x32xf32>
    %25 = tpu.iota {dimensions = array<i32: 1>} : vector<128x128xi32>
    %c0_17 = arith.constant 0 : index
    %c0_18 = arith.constant 0 : index
    %26 = vector.load %arg7[%c0_17, %c0_18] : memref<128x1xi32, #tpu.memory_space<vmem>>, vector<128x1xi32>
    %27 = vector.broadcast %26 : vector<128x1xi32> to vector<128x128xi32>
    %28 = arith.cmpi eq, %27, %25 : vector<128x128xi32>
    %cst_19 = arith.constant 1.000000e+00 : f32
    %cst_20 = arith.constant 0.000000e+00 : f32
    %29 = vector.broadcast %cst_19 : f32 to vector<128x128xf32>
    %30 = vector.broadcast %cst_20 : f32 to vector<128x128xf32>
    %31 = arith.select %28, %29, %30 : vector<128x128xi1>, vector<128x128xf32>
    %cst_21 = arith.constant dense<0.000000e+00> : vector<128x32xf32>
    %32 = tpu.matmul %31, %24, %cst_21 {dimension_numbers = #tpu.dot_dimension_numbers<[1], [0], [0], [1], [0, 0, 1, 1], [], []>} : vector<128x128xf32>, vector<128x32xf32>, vector<128x32xf32> -> vector<128x32xf32>
    %c0_22 = arith.constant 0 : index
    %c0_23 = arith.constant 0 : index
    %33 = vector.load %arg11[%c0_22, %c0_23] : memref<128x32xf32, #tpu.memory_space<vmem>>, vector<128x32xf32>
    tpu.vector_store %arg11[%c0_22, %c0_23], %32 {strides = array<i32>} : memref<128x32xf32, #tpu.memory_space<vmem>>, vector<128x32xf32>,
    %cst_24 = arith.constant 0.000000e+00 : f32
    %34 = vector.broadcast %cst_24 : f32 to vector<8x2048xf32>
    %c0_25 = arith.constant 0 : index
    %c0_26 = arith.constant 0 : index
    %35 = vector.load %arg12[%c0_25, %c0_26] : memref<8x2048xf32, #tpu.memory_space<vmem>>, vector<8x2048xf32>
    tpu.vector_store %arg12[%c0_25, %c0_26], %34 {strides = array<i32>} : memref<8x2048xf32, #tpu.memory_space<vmem>>, vector<8x2048xf32>,
    %c0_27 = arith.constant 0 : index
    %c0_28 = arith.constant 0 : index
    %36 = vector.load %arg11[%c0_27, %c0_28] : memref<128x32xf32, #tpu.memory_space<vmem>>, vector<2x32xf32>
    %c0_29 = arith.constant 0 : index
    %c0_30 = arith.constant 0 : index
    %37 = vector.load %arg12[%c0_29, %c0_30] : memref<8x2048xf32, #tpu.memory_space<vmem>>, vector<2x32xf32>
    tpu.vector_store %arg12[%c0_29, %c0_30], %36 {strides = array<i32>} : memref<8x2048xf32, #tpu.memory_space<vmem>>, vector<2x32xf32>,
    %c2 = arith.constant 2 : index
    %c0_31 = arith.constant 0 : index
    %38 = vector.load %arg11[%c2, %c0_31] : memref<128x32xf32, #tpu.memory_space<vmem>>, vector<2x32xf32>
    %c0_32 = arith.constant 0 : index
    %c32 = arith.constant 32 : index
    %39 = vector.load %arg12[%c0_32, %c32] : memref<8x2048xf32, #tpu.memory_space<vmem>>, vector<2x32xf32>
    tpu.vector_store %arg12[%c0_32, %c32], %38 {strides = array<i32>} : memref<8x2048xf32, #tpu.memory_space<vmem>>, vector<2x32xf32>,
    %c4 = arith.constant 4 : index
    %c0_33 = arith.constant 0 : index
    %40 = vector.load %arg11[%c4, %c0_33] : memref<128x32xf32, #tpu.memory_space<vmem>>, vector<2x32xf32>
    %c0_34 = arith.constant 0 : index
    %c64 = arith.constant 64 : index
    %41 = vector.load %arg12[%c0_34, %c64] : memref<8x2048xf32, #tpu.memory_space<vmem>>, vector<2x32xf32>
    tpu.vector_store %arg12[%c0_34, %c64], %40 {strides = array<i32>} : memref<8x2048xf32, #tpu.memory_space<vmem>>, vector<2x32xf32>,
    %c6 = arith.constant 6 : index
    %c0_35 = arith.constant 0 : index
    %42 = vector.load %arg11[%c6, %c0_35] : memref<128x32xf32, #tpu.memory_space<vmem>>, vector<2x32xf32>
    %c0_36 = arith.constant 0 : index
    %c96 = arith.constant 96 : index
    %43 = vector.load %arg12[%c0_36, %c96] : memref<8x2048xf32, #tpu.memory_space<vmem>>, vector<2x32xf32>
    tpu.vector_store %arg12[%c0_36, %c96], %42 {strides = array<i32>} : memref<8x2048xf32, #tpu.memory_space<vmem>>, vector<2x32xf32>,
    %c8 = arith.constant 8 : index
    %c0_37 = arith.constant 0 : index
    %44 = vector.load %arg11[%c8, %c0_37] : memref<128x32xf32, #tpu.memory_space<vmem>>, vector<2x32xf32>
    %c0_38 = arith.constant 0 : index
    %c128 = arith.constant 128 : index
    %45 = vector.load %arg12[%c0_38, %c128] : memref<8x2048xf32, #tpu.memory_space<vmem>>, vector<2x32xf32>
    tpu.vector_store %arg12[%c0_38, %c128], %44 {strides = array<i32>} : memref<8x2048xf32, #tpu.memory_space<vmem>>, vector<2x32xf32>,
    %c10 = arith.constant 10 : index
    %c0_39 = arith.constant 0 : index
    %46 = vector.load %arg11[%c10, %c0_39] : memref<128x32xf32, #tpu.memory_space<vmem>>, vector<2x32xf32>
    %c0_40 = arith.constant 0 : index
    %c160 = arith.constant 160 : index
    %47 = vector.load %arg12[%c0_40, %c160] : memref<8x2048xf32, #tpu.memory_space<vmem>>, vector<2x32xf32>
    tpu.vector_store %arg12[%c0_40, %c160], %46 {strides = array<i32>} : memref<8x2048xf32, #tpu.memory_space<vmem>>, vector<2x32xf32>,
    %c12 = arith.constant 12 : index
    %c0_41 = arith.constant 0 : index
    %48 = vector.load %arg11[%c12, %c0_41] : memref<128x32xf32, #tpu.memory_space<vmem>>, vector<2x32xf32>
    %c0_42 = arith.constant 0 : index
    %c192 = arith.constant 192 : index
    %49 = vector.load %arg12[%c0_42, %c192] : memref<8x2048xf32, #tpu.memory_space<vmem>>, vector<2x32xf32>
    tpu.vector_store %arg12[%c0_42, %c192], %48 {strides = array<i32>} : memref<8x2048xf32, #tpu.memory_space<vmem>>, vector<2x32xf32>,
    %c14 = arith.constant 14 : index
    %c0_43 = arith.constant 0 : index
    %50 = vector.load %arg11[%c14, %c0_43] : memref<128x32xf32, #tpu.memory_space<vmem>>, vector<2x32xf32>
    %c0_44 = arith.constant 0 : index
    %c224 = arith.constant 224 : index
    %51 = vector.load %arg12[%c0_44, %c224] : memref<8x2048xf32, #tpu.memory_space<vmem>>, vector<2x32xf32>
    tpu.vector_store %arg12[%c0_44, %c224], %50 {strides = array<i32>} : memref<8x2048xf32, #tpu.memory_space<vmem>>, vector<2x32xf32>,
    %c16 = arith.constant 16 : index
    %c0_45 = arith.constant 0 : index
    %52 = vector.load %arg11[%c16, %c0_45] : memref<128x32xf32, #tpu.memory_space<vmem>>, vector<2x32xf32>
    %c0_46 = arith.constant 0 : index
    %c256 = arith.constant 256 : index
    %53 = vector.load %arg12[%c0_46, %c256] : memref<8x2048xf32, #tpu.memory_space<vmem>>, vector<2x32xf32>
    tpu.vector_store %arg12[%c0_46, %c256], %52 {strides = array<i32>} : memref<8x2048xf32, #tpu.memory_space<vmem>>, vector<2x32xf32>,
    %c18 = arith.constant 18 : index
    %c0_47 = arith.constant 0 : index
    %54 = vector.load %arg11[%c18, %c0_47] : memref<128x32xf32, #tpu.memory_space<vmem>>, vector<2x32xf32>
    %c0_48 = arith.constant 0 : index
    %c288 = arith.constant 288 : index
    %55 = vector.load %arg12[%c0_48, %c288] : memref<8x2048xf32, #tpu.memory_space<vmem>>, vector<2x32xf32>
    tpu.vector_store %arg12[%c0_48, %c288], %54 {strides = array<i32>} : memref<8x2048xf32, #tpu.memory_space<vmem>>, vector<2x32xf32>,
    %c20 = arith.constant 20 : index
    %c0_49 = arith.constant 0 : index
    %56 = vector.load %arg11[%c20, %c0_49] : memref<128x32xf32, #tpu.memory_space<vmem>>, vector<2x32xf32>
    %c0_50 = arith.constant 0 : index
    %c320 = arith.constant 320 : index
    %57 = vector.load %arg12[%c0_50, %c320] : memref<8x2048xf32, #tpu.memory_space<vmem>>, vector<2x32xf32>
    tpu.vector_store %arg12[%c0_50, %c320], %56 {strides = array<i32>} : memref<8x2048xf32, #tpu.memory_space<vmem>>, vector<2x32xf32>,
    %c22 = arith.constant 22 : index
    %c0_51 = arith.constant 0 : index
    %58 = vector.load %arg11[%c22, %c0_51] : memref<128x32xf32, #tpu.memory_space<vmem>>, vector<2x32xf32>
    %c0_52 = arith.constant 0 : index
    %c352 = arith.constant 352 : index
    %59 = vector.load %arg12[%c0_52, %c352] : memref<8x2048xf32, #tpu.memory_space<vmem>>, vector<2x32xf32>
    tpu.vector_store %arg12[%c0_52, %c352], %58 {strides = array<i32>} : memref<8x2048xf32, #tpu.memory_space<vmem>>, vector<2x32xf32>,
    %c24 = arith.constant 24 : index
    %c0_53 = arith.constant 0 : index
    %60 = vector.load %arg11[%c24, %c0_53] : memref<128x32xf32, #tpu.memory_space<vmem>>, vector<2x32xf32>
    %c0_54 = arith.constant 0 : index
    %c384 = arith.constant 384 : index
    %61 = vector.load %arg12[%c0_54, %c384] : memref<8x2048xf32, #tpu.memory_space<vmem>>, vector<2x32xf32>
    tpu.vector_store %arg12[%c0_54, %c384], %60 {strides = array<i32>} : memref<8x2048xf32, #tpu.memory_space<vmem>>, vector<2x32xf32>,
    %c26 = arith.constant 26 : index
    %c0_55 = arith.constant 0 : index
    %62 = vector.load %arg11[%c26, %c0_55] : memref<128x32xf32, #tpu.memory_space<vmem>>, vector<2x32xf32>
    %c0_56 = arith.constant 0 : index
    %c416 = arith.constant 416 : index
    %63 = vector.load %arg12[%c0_56, %c416] : memref<8x2048xf32, #tpu.memory_space<vmem>>, vector<2x32xf32>
    tpu.vector_store %arg12[%c0_56, %c416], %62 {strides = array<i32>} : memref<8x2048xf32, #tpu.memory_space<vmem>>, vector<2x32xf32>,
    %c28 = arith.constant 28 : index
    %c0_57 = arith.constant 0 : index
    %64 = vector.load %arg11[%c28, %c0_57] : memref<128x32xf32, #tpu.memory_space<vmem>>, vector<2x32xf32>
    %c0_58 = arith.constant 0 : index
    %c448 = arith.constant 448 : index
    %65 = vector.load %arg12[%c0_58, %c448] : memref<8x2048xf32, #tpu.memory_space<vmem>>, vector<2x32xf32>
    tpu.vector_store %arg12[%c0_58, %c448], %64 {strides = array<i32>} : memref<8x2048xf32, #tpu.memory_space<vmem>>, vector<2x32xf32>,
    %c30 = arith.constant 30 : index
    %c0_59 = arith.constant 0 : index
    %66 = vector.load %arg11[%c30, %c0_59] : memref<128x32xf32, #tpu.memory_space<vmem>>, vector<2x32xf32>
    %c0_60 = arith.constant 0 : index
    %c480 = arith.constant 480 : index
    %67 = vector.load %arg12[%c0_60, %c480] : memref<8x2048xf32, #tpu.memory_space<vmem>>, vector<2x32xf32>
    tpu.vector_store %arg12[%c0_60, %c480], %66 {strides = array<i32>} : memref<8x2048xf32, #tpu.memory_space<vmem>>, vector<2x32xf32>,
    %c32_61 = arith.constant 32 : index
    %c0_62 = arith.constant 0 : index
    %68 = vector.load %arg11[%c32_61, %c0_62] : memref<128x32xf32, #tpu.memory_space<vmem>>, vector<2x32xf32>
    %c0_63 = arith.constant 0 : index
    %c512 = arith.constant 512 : index
    %69 = vector.load %arg12[%c0_63, %c512] : memref<8x2048xf32, #tpu.memory_space<vmem>>, vector<2x32xf32>
    tpu.vector_store %arg12[%c0_63, %c512], %68 {strides = array<i32>} : memref<8x2048xf32, #tpu.memory_space<vmem>>, vector<2x32xf32>,
    %c34 = arith.constant 34 : index
    %c0_64 = arith.constant 0 : index
    %70 = vector.load %arg11[%c34, %c0_64] : memref<128x32xf32, #tpu.memory_space<vmem>>, vector<2x32xf32>
    %c0_65 = arith.constant 0 : index
    %c544 = arith.constant 544 : index
    %71 = vector.load %arg12[%c0_65, %c544] : memref<8x2048xf32, #tpu.memory_space<vmem>>, vector<2x32xf32>
    tpu.vector_store %arg12[%c0_65, %c544], %70 {strides = array<i32>} : memref<8x2048xf32, #tpu.memory_space<vmem>>, vector<2x32xf32>,
    %c36 = arith.constant 36 : index
    %c0_66 = arith.constant 0 : index
    %72 = vector.load %arg11[%c36, %c0_66] : memref<128x32xf32, #tpu.memory_space<vmem>>, vector<2x32xf32>
    %c0_67 = arith.constant 0 : index
    %c576 = arith.constant 576 : index
    %73 = vector.load %arg12[%c0_67, %c576] : memref<8x2048xf32, #tpu.memory_space<vmem>>, vector<2x32xf32>
    tpu.vector_store %arg12[%c0_67, %c576], %72 {strides = array<i32>} : memref<8x2048xf32, #tpu.memory_space<vmem>>, vector<2x32xf32>,
    %c38 = arith.constant 38 : index
    %c0_68 = arith.constant 0 : index
    %74 = vector.load %arg11[%c38, %c0_68] : memref<128x32xf32, #tpu.memory_space<vmem>>, vector<2x32xf32>
    %c0_69 = arith.constant 0 : index
    %c608 = arith.constant 608 : index
    %75 = vector.load %arg12[%c0_69, %c608] : memref<8x2048xf32, #tpu.memory_space<vmem>>, vector<2x32xf32>
    tpu.vector_store %arg12[%c0_69, %c608], %74 {strides = array<i32>} : memref<8x2048xf32, #tpu.memory_space<vmem>>, vector<2x32xf32>,
    %c40 = arith.constant 40 : index
    %c0_70 = arith.constant 0 : index
    %76 = vector.load %arg11[%c40, %c0_70] : memref<128x32xf32, #tpu.memory_space<vmem>>, vector<2x32xf32>
    %c0_71 = arith.constant 0 : index
    %c640 = arith.constant 640 : index
    %77 = vector.load %arg12[%c0_71, %c640] : memref<8x2048xf32, #tpu.memory_space<vmem>>, vector<2x32xf32>
    tpu.vector_store %arg12[%c0_71, %c640], %76 {strides = array<i32>} : memref<8x2048xf32, #tpu.memory_space<vmem>>, vector<2x32xf32>,
    %c42 = arith.constant 42 : index
    %c0_72 = arith.constant 0 : index
    %78 = vector.load %arg11[%c42, %c0_72] : memref<128x32xf32, #tpu.memory_space<vmem>>, vector<2x32xf32>
    %c0_73 = arith.constant 0 : index
    %c672 = arith.constant 672 : index
    %79 = vector.load %arg12[%c0_73, %c672] : memref<8x2048xf32, #tpu.memory_space<vmem>>, vector<2x32xf32>
    tpu.vector_store %arg12[%c0_73, %c672], %78 {strides = array<i32>} : memref<8x2048xf32, #tpu.memory_space<vmem>>, vector<2x32xf32>,
    %c44 = arith.constant 44 : index
    %c0_74 = arith.constant 0 : index
    %80 = vector.load %arg11[%c44, %c0_74] : memref<128x32xf32, #tpu.memory_space<vmem>>, vector<2x32xf32>
    %c0_75 = arith.constant 0 : index
    %c704 = arith.constant 704 : index
    %81 = vector.load %arg12[%c0_75, %c704] : memref<8x2048xf32, #tpu.memory_space<vmem>>, vector<2x32xf32>
    tpu.vector_store %arg12[%c0_75, %c704], %80 {strides = array<i32>} : memref<8x2048xf32, #tpu.memory_space<vmem>>, vector<2x32xf32>,
    %c46 = arith.constant 46 : index
    %c0_76 = arith.constant 0 : index
    %82 = vector.load %arg11[%c46, %c0_76] : memref<128x32xf32, #tpu.memory_space<vmem>>, vector<2x32xf32>
    %c0_77 = arith.constant 0 : index
    %c736 = arith.constant 736 : index
    %83 = vector.load %arg12[%c0_77, %c736] : memref<8x2048xf32, #tpu.memory_space<vmem>>, vector<2x32xf32>
    tpu.vector_store %arg12[%c0_77, %c736], %82 {strides = array<i32>} : memref<8x2048xf32, #tpu.memory_space<vmem>>, vector<2x32xf32>,
    %c48 = arith.constant 48 : index
    %c0_78 = arith.constant 0 : index
    %84 = vector.load %arg11[%c48, %c0_78] : memref<128x32xf32, #tpu.memory_space<vmem>>, vector<2x32xf32>
    %c0_79 = arith.constant 0 : index
    %c768 = arith.constant 768 : index
    %85 = vector.load %arg12[%c0_79, %c768] : memref<8x2048xf32, #tpu.memory_space<vmem>>, vector<2x32xf32>
    tpu.vector_store %arg12[%c0_79, %c768], %84 {strides = array<i32>} : memref<8x2048xf32, #tpu.memory_space<vmem>>, vector<2x32xf32>,
    %c50 = arith.constant 50 : index
    %c0_80 = arith.constant 0 : index
    %86 = vector.load %arg11[%c50, %c0_80] : memref<128x32xf32, #tpu.memory_space<vmem>>, vector<2x32xf32>
    %c0_81 = arith.constant 0 : index
    %c800 = arith.constant 800 : index
    %87 = vector.load %arg12[%c0_81, %c800] : memref<8x2048xf32, #tpu.memory_space<vmem>>, vector<2x32xf32>
    tpu.vector_store %arg12[%c0_81, %c800], %86 {strides = array<i32>} : memref<8x2048xf32, #tpu.memory_space<vmem>>, vector<2x32xf32>,
    %c52 = arith.constant 52 : index
    %c0_82 = arith.constant 0 : index
    %88 = vector.load %arg11[%c52, %c0_82] : memref<128x32xf32, #tpu.memory_space<vmem>>, vector<2x32xf32>
    %c0_83 = arith.constant 0 : index
    %c832 = arith.constant 832 : index
    %89 = vector.load %arg12[%c0_83, %c832] : memref<8x2048xf32, #tpu.memory_space<vmem>>, vector<2x32xf32>
    tpu.vector_store %arg12[%c0_83, %c832], %88 {strides = array<i32>} : memref<8x2048xf32, #tpu.memory_space<vmem>>, vector<2x32xf32>,
    %c54 = arith.constant 54 : index
    %c0_84 = arith.constant 0 : index
    %90 = vector.load %arg11[%c54, %c0_84] : memref<128x32xf32, #tpu.memory_space<vmem>>, vector<2x32xf32>
    %c0_85 = arith.constant 0 : index
    %c864 = arith.constant 864 : index
    %91 = vector.load %arg12[%c0_85, %c864] : memref<8x2048xf32, #tpu.memory_space<vmem>>, vector<2x32xf32>
    tpu.vector_store %arg12[%c0_85, %c864], %90 {strides = array<i32>} : memref<8x2048xf32, #tpu.memory_space<vmem>>, vector<2x32xf32>,
    %c56 = arith.constant 56 : index
    %c0_86 = arith.constant 0 : index
    %92 = vector.load %arg11[%c56, %c0_86] : memref<128x32xf32, #tpu.memory_space<vmem>>, vector<2x32xf32>
    %c0_87 = arith.constant 0 : index
    %c896 = arith.constant 896 : index
    %93 = vector.load %arg12[%c0_87, %c896] : memref<8x2048xf32, #tpu.memory_space<vmem>>, vector<2x32xf32>
    tpu.vector_store %arg12[%c0_87, %c896], %92 {strides = array<i32>} : memref<8x2048xf32, #tpu.memory_space<vmem>>, vector<2x32xf32>,
    %c58 = arith.constant 58 : index
    %c0_88 = arith.constant 0 : index
    %94 = vector.load %arg11[%c58, %c0_88] : memref<128x32xf32, #tpu.memory_space<vmem>>, vector<2x32xf32>
    %c0_89 = arith.constant 0 : index
    %c928 = arith.constant 928 : index
    %95 = vector.load %arg12[%c0_89, %c928] : memref<8x2048xf32, #tpu.memory_space<vmem>>, vector<2x32xf32>
    tpu.vector_store %arg12[%c0_89, %c928], %94 {strides = array<i32>} : memref<8x2048xf32, #tpu.memory_space<vmem>>, vector<2x32xf32>,
    %c60 = arith.constant 60 : index
    %c0_90 = arith.constant 0 : index
    %96 = vector.load %arg11[%c60, %c0_90] : memref<128x32xf32, #tpu.memory_space<vmem>>, vector<2x32xf32>
    %c0_91 = arith.constant 0 : index
    %c960 = arith.constant 960 : index
    %97 = vector.load %arg12[%c0_91, %c960] : memref<8x2048xf32, #tpu.memory_space<vmem>>, vector<2x32xf32>
    tpu.vector_store %arg12[%c0_91, %c960], %96 {strides = array<i32>} : memref<8x2048xf32, #tpu.memory_space<vmem>>, vector<2x32xf32>,
    %c62 = arith.constant 62 : index
    %c0_92 = arith.constant 0 : index
    %98 = vector.load %arg11[%c62, %c0_92] : memref<128x32xf32, #tpu.memory_space<vmem>>, vector<2x32xf32>
    %c0_93 = arith.constant 0 : index
    %c992 = arith.constant 992 : index
    %99 = vector.load %arg12[%c0_93, %c992] : memref<8x2048xf32, #tpu.memory_space<vmem>>, vector<2x32xf32>
    tpu.vector_store %arg12[%c0_93, %c992], %98 {strides = array<i32>} : memref<8x2048xf32, #tpu.memory_space<vmem>>, vector<2x32xf32>,
    %c64_94 = arith.constant 64 : index
    %c0_95 = arith.constant 0 : index
    %100 = vector.load %arg11[%c64_94, %c0_95] : memref<128x32xf32, #tpu.memory_space<vmem>>, vector<2x32xf32>
    %c0_96 = arith.constant 0 : index
    %c1024 = arith.constant 1024 : index
    %101 = vector.load %arg12[%c0_96, %c1024] : memref<8x2048xf32, #tpu.memory_space<vmem>>, vector<2x32xf32>
    tpu.vector_store %arg12[%c0_96, %c1024], %100 {strides = array<i32>} : memref<8x2048xf32, #tpu.memory_space<vmem>>, vector<2x32xf32>,
    %c66 = arith.constant 66 : index
    %c0_97 = arith.constant 0 : index
    %102 = vector.load %arg11[%c66, %c0_97] : memref<128x32xf32, #tpu.memory_space<vmem>>, vector<2x32xf32>
    %c0_98 = arith.constant 0 : index
    %c1056 = arith.constant 1056 : index
    %103 = vector.load %arg12[%c0_98, %c1056] : memref<8x2048xf32, #tpu.memory_space<vmem>>, vector<2x32xf32>
    tpu.vector_store %arg12[%c0_98, %c1056], %102 {strides = array<i32>} : memref<8x2048xf32, #tpu.memory_space<vmem>>, vector<2x32xf32>,
    %c68 = arith.constant 68 : index
    %c0_99 = arith.constant 0 : index
    %104 = vector.load %arg11[%c68, %c0_99] : memref<128x32xf32, #tpu.memory_space<vmem>>, vector<2x32xf32>
    %c0_100 = arith.constant 0 : index
    %c1088 = arith.constant 1088 : index
    %105 = vector.load %arg12[%c0_100, %c1088] : memref<8x2048xf32, #tpu.memory_space<vmem>>, vector<2x32xf32>
    tpu.vector_store %arg12[%c0_100, %c1088], %104 {strides = array<i32>} : memref<8x2048xf32, #tpu.memory_space<vmem>>, vector<2x32xf32>,
    %c70 = arith.constant 70 : index
    %c0_101 = arith.constant 0 : index
    %106 = vector.load %arg11[%c70, %c0_101] : memref<128x32xf32, #tpu.memory_space<vmem>>, vector<2x32xf32>
    %c0_102 = arith.constant 0 : index
    %c1120 = arith.constant 1120 : index
    %107 = vector.load %arg12[%c0_102, %c1120] : memref<8x2048xf32, #tpu.memory_space<vmem>>, vector<2x32xf32>
    tpu.vector_store %arg12[%c0_102, %c1120], %106 {strides = array<i32>} : memref<8x2048xf32, #tpu.memory_space<vmem>>, vector<2x32xf32>,
    %c72 = arith.constant 72 : index
    %c0_103 = arith.constant 0 : index
    %108 = vector.load %arg11[%c72, %c0_103] : memref<128x32xf32, #tpu.memory_space<vmem>>, vector<2x32xf32>
    %c0_104 = arith.constant 0 : index
    %c1152 = arith.constant 1152 : index
    %109 = vector.load %arg12[%c0_104, %c1152] : memref<8x2048xf32, #tpu.memory_space<vmem>>, vector<2x32xf32>
    tpu.vector_store %arg12[%c0_104, %c1152], %108 {strides = array<i32>} : memref<8x2048xf32, #tpu.memory_space<vmem>>, vector<2x32xf32>,
    %c74 = arith.constant 74 : index
    %c0_105 = arith.constant 0 : index
    %110 = vector.load %arg11[%c74, %c0_105] : memref<128x32xf32, #tpu.memory_space<vmem>>, vector<2x32xf32>
    %c0_106 = arith.constant 0 : index
    %c1184 = arith.constant 1184 : index
    %111 = vector.load %arg12[%c0_106, %c1184] : memref<8x2048xf32, #tpu.memory_space<vmem>>, vector<2x32xf32>
    tpu.vector_store %arg12[%c0_106, %c1184], %110 {strides = array<i32>} : memref<8x2048xf32, #tpu.memory_space<vmem>>, vector<2x32xf32>,
    %c76 = arith.constant 76 : index
    %c0_107 = arith.constant 0 : index
    %112 = vector.load %arg11[%c76, %c0_107] : memref<128x32xf32, #tpu.memory_space<vmem>>, vector<2x32xf32>
    %c0_108 = arith.constant 0 : index
    %c1216 = arith.constant 1216 : index
    %113 = vector.load %arg12[%c0_108, %c1216] : memref<8x2048xf32, #tpu.memory_space<vmem>>, vector<2x32xf32>
    tpu.vector_store %arg12[%c0_108, %c1216], %112 {strides = array<i32>} : memref<8x2048xf32, #tpu.memory_space<vmem>>, vector<2x32xf32>,
    %c78 = arith.constant 78 : index
    %c0_109 = arith.constant 0 : index
    %114 = vector.load %arg11[%c78, %c0_109] : memref<128x32xf32, #tpu.memory_space<vmem>>, vector<2x32xf32>
    %c0_110 = arith.constant 0 : index
    %c1248 = arith.constant 1248 : index
    %115 = vector.load %arg12[%c0_110, %c1248] : memref<8x2048xf32, #tpu.memory_space<vmem>>, vector<2x32xf32>
    tpu.vector_store %arg12[%c0_110, %c1248], %114 {strides = array<i32>} : memref<8x2048xf32, #tpu.memory_space<vmem>>, vector<2x32xf32>,
    %c80 = arith.constant 80 : index
    %c0_111 = arith.constant 0 : index
    %116 = vector.load %arg11[%c80, %c0_111] : memref<128x32xf32, #tpu.memory_space<vmem>>, vector<2x32xf32>
    %c0_112 = arith.constant 0 : index
    %c1280 = arith.constant 1280 : index
    %117 = vector.load %arg12[%c0_112, %c1280] : memref<8x2048xf32, #tpu.memory_space<vmem>>, vector<2x32xf32>
    tpu.vector_store %arg12[%c0_112, %c1280], %116 {strides = array<i32>} : memref<8x2048xf32, #tpu.memory_space<vmem>>, vector<2x32xf32>,
    %c82 = arith.constant 82 : index
    %c0_113 = arith.constant 0 : index
    %118 = vector.load %arg11[%c82, %c0_113] : memref<128x32xf32, #tpu.memory_space<vmem>>, vector<2x32xf32>
    %c0_114 = arith.constant 0 : index
    %c1312 = arith.constant 1312 : index
    %119 = vector.load %arg12[%c0_114, %c1312] : memref<8x2048xf32, #tpu.memory_space<vmem>>, vector<2x32xf32>
    tpu.vector_store %arg12[%c0_114, %c1312], %118 {strides = array<i32>} : memref<8x2048xf32, #tpu.memory_space<vmem>>, vector<2x32xf32>,
    %c84 = arith.constant 84 : index
    %c0_115 = arith.constant 0 : index
    %120 = vector.load %arg11[%c84, %c0_115] : memref<128x32xf32, #tpu.memory_space<vmem>>, vector<2x32xf32>
    %c0_116 = arith.constant 0 : index
    %c1344 = arith.constant 1344 : index
    %121 = vector.load %arg12[%c0_116, %c1344] : memref<8x2048xf32, #tpu.memory_space<vmem>>, vector<2x32xf32>
    tpu.vector_store %arg12[%c0_116, %c1344], %120 {strides = array<i32>} : memref<8x2048xf32, #tpu.memory_space<vmem>>, vector<2x32xf32>,
    %c86 = arith.constant 86 : index
    %c0_117 = arith.constant 0 : index
    %122 = vector.load %arg11[%c86, %c0_117] : memref<128x32xf32, #tpu.memory_space<vmem>>, vector<2x32xf32>
    %c0_118 = arith.constant 0 : index
    %c1376 = arith.constant 1376 : index
    %123 = vector.load %arg12[%c0_118, %c1376] : memref<8x2048xf32, #tpu.memory_space<vmem>>, vector<2x32xf32>
    tpu.vector_store %arg12[%c0_118, %c1376], %122 {strides = array<i32>} : memref<8x2048xf32, #tpu.memory_space<vmem>>, vector<2x32xf32>,
    %c88 = arith.constant 88 : index
    %c0_119 = arith.constant 0 : index
    %124 = vector.load %arg11[%c88, %c0_119] : memref<128x32xf32, #tpu.memory_space<vmem>>, vector<2x32xf32>
    %c0_120 = arith.constant 0 : index
    %c1408 = arith.constant 1408 : index
    %125 = vector.load %arg12[%c0_120, %c1408] : memref<8x2048xf32, #tpu.memory_space<vmem>>, vector<2x32xf32>
    tpu.vector_store %arg12[%c0_120, %c1408], %124 {strides = array<i32>} : memref<8x2048xf32, #tpu.memory_space<vmem>>, vector<2x32xf32>,
    %c90 = arith.constant 90 : index
    %c0_121 = arith.constant 0 : index
    %126 = vector.load %arg11[%c90, %c0_121] : memref<128x32xf32, #tpu.memory_space<vmem>>, vector<2x32xf32>
    %c0_122 = arith.constant 0 : index
    %c1440 = arith.constant 1440 : index
    %127 = vector.load %arg12[%c0_122, %c1440] : memref<8x2048xf32, #tpu.memory_space<vmem>>, vector<2x32xf32>
    tpu.vector_store %arg12[%c0_122, %c1440], %126 {strides = array<i32>} : memref<8x2048xf32, #tpu.memory_space<vmem>>, vector<2x32xf32>,
    %c92 = arith.constant 92 : index
    %c0_123 = arith.constant 0 : index
    %128 = vector.load %arg11[%c92, %c0_123] : memref<128x32xf32, #tpu.memory_space<vmem>>, vector<2x32xf32>
    %c0_124 = arith.constant 0 : index
    %c1472 = arith.constant 1472 : index
    %129 = vector.load %arg12[%c0_124, %c1472] : memref<8x2048xf32, #tpu.memory_space<vmem>>, vector<2x32xf32>
    tpu.vector_store %arg12[%c0_124, %c1472], %128 {strides = array<i32>} : memref<8x2048xf32, #tpu.memory_space<vmem>>, vector<2x32xf32>,
    %c94 = arith.constant 94 : index
    %c0_125 = arith.constant 0 : index
    %130 = vector.load %arg11[%c94, %c0_125] : memref<128x32xf32, #tpu.memory_space<vmem>>, vector<2x32xf32>
    %c0_126 = arith.constant 0 : index
    %c1504 = arith.constant 1504 : index
    %131 = vector.load %arg12[%c0_126, %c1504] : memref<8x2048xf32, #tpu.memory_space<vmem>>, vector<2x32xf32>
    tpu.vector_store %arg12[%c0_126, %c1504], %130 {strides = array<i32>} : memref<8x2048xf32, #tpu.memory_space<vmem>>, vector<2x32xf32>,
    %c96_127 = arith.constant 96 : index
    %c0_128 = arith.constant 0 : index
    %132 = vector.load %arg11[%c96_127, %c0_128] : memref<128x32xf32, #tpu.memory_space<vmem>>, vector<2x32xf32>
    %c0_129 = arith.constant 0 : index
    %c1536 = arith.constant 1536 : index
    %133 = vector.load %arg12[%c0_129, %c1536] : memref<8x2048xf32, #tpu.memory_space<vmem>>, vector<2x32xf32>
    tpu.vector_store %arg12[%c0_129, %c1536], %132 {strides = array<i32>} : memref<8x2048xf32, #tpu.memory_space<vmem>>, vector<2x32xf32>,
    %c98 = arith.constant 98 : index
    %c0_130 = arith.constant 0 : index
    %134 = vector.load %arg11[%c98, %c0_130] : memref<128x32xf32, #tpu.memory_space<vmem>>, vector<2x32xf32>
    %c0_131 = arith.constant 0 : index
    %c1568 = arith.constant 1568 : index
    %135 = vector.load %arg12[%c0_131, %c1568] : memref<8x2048xf32, #tpu.memory_space<vmem>>, vector<2x32xf32>
    tpu.vector_store %arg12[%c0_131, %c1568], %134 {strides = array<i32>} : memref<8x2048xf32, #tpu.memory_space<vmem>>, vector<2x32xf32>,
    %c100 = arith.constant 100 : index
    %c0_132 = arith.constant 0 : index
    %136 = vector.load %arg11[%c100, %c0_132] : memref<128x32xf32, #tpu.memory_space<vmem>>, vector<2x32xf32>
    %c0_133 = arith.constant 0 : index
    %c1600 = arith.constant 1600 : index
    %137 = vector.load %arg12[%c0_133, %c1600] : memref<8x2048xf32, #tpu.memory_space<vmem>>, vector<2x32xf32>
    tpu.vector_store %arg12[%c0_133, %c1600], %136 {strides = array<i32>} : memref<8x2048xf32, #tpu.memory_space<vmem>>, vector<2x32xf32>,
    %c102 = arith.constant 102 : index
    %c0_134 = arith.constant 0 : index
    %138 = vector.load %arg11[%c102, %c0_134] : memref<128x32xf32, #tpu.memory_space<vmem>>, vector<2x32xf32>
    %c0_135 = arith.constant 0 : index
    %c1632 = arith.constant 1632 : index
    %139 = vector.load %arg12[%c0_135, %c1632] : memref<8x2048xf32, #tpu.memory_space<vmem>>, vector<2x32xf32>
    tpu.vector_store %arg12[%c0_135, %c1632], %138 {strides = array<i32>} : memref<8x2048xf32, #tpu.memory_space<vmem>>, vector<2x32xf32>,
    %c104 = arith.constant 104 : index
    %c0_136 = arith.constant 0 : index
    %140 = vector.load %arg11[%c104, %c0_136] : memref<128x32xf32, #tpu.memory_space<vmem>>, vector<2x32xf32>
    %c0_137 = arith.constant 0 : index
    %c1664 = arith.constant 1664 : index
    %141 = vector.load %arg12[%c0_137, %c1664] : memref<8x2048xf32, #tpu.memory_space<vmem>>, vector<2x32xf32>
    tpu.vector_store %arg12[%c0_137, %c1664], %140 {strides = array<i32>} : memref<8x2048xf32, #tpu.memory_space<vmem>>, vector<2x32xf32>,
    %c106 = arith.constant 106 : index
    %c0_138 = arith.constant 0 : index
    %142 = vector.load %arg11[%c106, %c0_138] : memref<128x32xf32, #tpu.memory_space<vmem>>, vector<2x32xf32>
    %c0_139 = arith.constant 0 : index
    %c1696 = arith.constant 1696 : index
    %143 = vector.load %arg12[%c0_139, %c1696] : memref<8x2048xf32, #tpu.memory_space<vmem>>, vector<2x32xf32>
    tpu.vector_store %arg12[%c0_139, %c1696], %142 {strides = array<i32>} : memref<8x2048xf32, #tpu.memory_space<vmem>>, vector<2x32xf32>,
    %c108 = arith.constant 108 : index
    %c0_140 = arith.constant 0 : index
    %144 = vector.load %arg11[%c108, %c0_140] : memref<128x32xf32, #tpu.memory_space<vmem>>, vector<2x32xf32>
    %c0_141 = arith.constant 0 : index
    %c1728 = arith.constant 1728 : index
    %145 = vector.load %arg12[%c0_141, %c1728] : memref<8x2048xf32, #tpu.memory_space<vmem>>, vector<2x32xf32>
    tpu.vector_store %arg12[%c0_141, %c1728], %144 {strides = array<i32>} : memref<8x2048xf32, #tpu.memory_space<vmem>>, vector<2x32xf32>,
    %c110 = arith.constant 110 : index
    %c0_142 = arith.constant 0 : index
    %146 = vector.load %arg11[%c110, %c0_142] : memref<128x32xf32, #tpu.memory_space<vmem>>, vector<2x32xf32>
    %c0_143 = arith.constant 0 : index
    %c1760 = arith.constant 1760 : index
    %147 = vector.load %arg12[%c0_143, %c1760] : memref<8x2048xf32, #tpu.memory_space<vmem>>, vector<2x32xf32>
    tpu.vector_store %arg12[%c0_143, %c1760], %146 {strides = array<i32>} : memref<8x2048xf32, #tpu.memory_space<vmem>>, vector<2x32xf32>,
    %c112 = arith.constant 112 : index
    %c0_144 = arith.constant 0 : index
    %148 = vector.load %arg11[%c112, %c0_144] : memref<128x32xf32, #tpu.memory_space<vmem>>, vector<2x32xf32>
    %c0_145 = arith.constant 0 : index
    %c1792 = arith.constant 1792 : index
    %149 = vector.load %arg12[%c0_145, %c1792] : memref<8x2048xf32, #tpu.memory_space<vmem>>, vector<2x32xf32>
    tpu.vector_store %arg12[%c0_145, %c1792], %148 {strides = array<i32>} : memref<8x2048xf32, #tpu.memory_space<vmem>>, vector<2x32xf32>,
    %c114 = arith.constant 114 : index
    %c0_146 = arith.constant 0 : index
    %150 = vector.load %arg11[%c114, %c0_146] : memref<128x32xf32, #tpu.memory_space<vmem>>, vector<2x32xf32>
    %c0_147 = arith.constant 0 : index
    %c1824 = arith.constant 1824 : index
    %151 = vector.load %arg12[%c0_147, %c1824] : memref<8x2048xf32, #tpu.memory_space<vmem>>, vector<2x32xf32>
    tpu.vector_store %arg12[%c0_147, %c1824], %150 {strides = array<i32>} : memref<8x2048xf32, #tpu.memory_space<vmem>>, vector<2x32xf32>,
    %c116 = arith.constant 116 : index
    %c0_148 = arith.constant 0 : index
    %152 = vector.load %arg11[%c116, %c0_148] : memref<128x32xf32, #tpu.memory_space<vmem>>, vector<2x32xf32>
    %c0_149 = arith.constant 0 : index
    %c1856 = arith.constant 1856 : index
    %153 = vector.load %arg12[%c0_149, %c1856] : memref<8x2048xf32, #tpu.memory_space<vmem>>, vector<2x32xf32>
    tpu.vector_store %arg12[%c0_149, %c1856], %152 {strides = array<i32>} : memref<8x2048xf32, #tpu.memory_space<vmem>>, vector<2x32xf32>,
    %c118 = arith.constant 118 : index
    %c0_150 = arith.constant 0 : index
    %154 = vector.load %arg11[%c118, %c0_150] : memref<128x32xf32, #tpu.memory_space<vmem>>, vector<2x32xf32>
    %c0_151 = arith.constant 0 : index
    %c1888 = arith.constant 1888 : index
    %155 = vector.load %arg12[%c0_151, %c1888] : memref<8x2048xf32, #tpu.memory_space<vmem>>, vector<2x32xf32>
    tpu.vector_store %arg12[%c0_151, %c1888], %154 {strides = array<i32>} : memref<8x2048xf32, #tpu.memory_space<vmem>>, vector<2x32xf32>,
    %c120 = arith.constant 120 : index
    %c0_152 = arith.constant 0 : index
    %156 = vector.load %arg11[%c120, %c0_152] : memref<128x32xf32, #tpu.memory_space<vmem>>, vector<2x32xf32>
    %c0_153 = arith.constant 0 : index
    %c1920 = arith.constant 1920 : index
    %157 = vector.load %arg12[%c0_153, %c1920] : memref<8x2048xf32, #tpu.memory_space<vmem>>, vector<2x32xf32>
    tpu.vector_store %arg12[%c0_153, %c1920], %156 {strides = array<i32>} : memref<8x2048xf32, #tpu.memory_space<vmem>>, vector<2x32xf32>,
    %c122 = arith.constant 122 : index
    %c0_154 = arith.constant 0 : index
    %158 = vector.load %arg11[%c122, %c0_154] : memref<128x32xf32, #tpu.memory_space<vmem>>, vector<2x32xf32>
    %c0_155 = arith.constant 0 : index
    %c1952 = arith.constant 1952 : index
    %159 = vector.load %arg12[%c0_155, %c1952] : memref<8x2048xf32, #tpu.memory_space<vmem>>, vector<2x32xf32>
    tpu.vector_store %arg12[%c0_155, %c1952], %158 {strides = array<i32>} : memref<8x2048xf32, #tpu.memory_space<vmem>>, vector<2x32xf32>,
    %c0_i32_156 = arith.constant 0 : i32
    %160 = tpu.memref_slice %arg14[%c0_i32_156] : memref<1x!tpu.dma_semaphore, #tpu.memory_space<semaphore_mem>> -> memref<1x!tpu.dma_semaphore, #tpu.memory_space<semaphore_mem>>
    %161 = tpu.memref_squeeze %160 : memref<1x!tpu.dma_semaphore, #tpu.memory_space<semaphore_mem>> -> memref<!tpu.dma_semaphore, #tpu.memory_space<semaphore_mem>>
    tpu.wait_dma2 semaphore(%161 : memref<!tpu.dma_semaphore, #tpu.memory_space<semaphore_mem>>) src(%arg8 : memref<2048x256xbf16, #tpu.memory_space<any>>) dst(%arg13 : memref<2048x256xbf16, #tpu.memory_space<vmem>>)
    %c0_157 = arith.constant 0 : index
    %c0_158 = arith.constant 0 : index
    %162 = vector.load %arg12[%c0_157, %c0_158] : memref<8x2048xf32, #tpu.memory_space<vmem>>, vector<8x2048xf32>
    %163 = arith.truncf %162 : vector<8x2048xf32> to vector<8x2048xbf16>
    %c0_159 = arith.constant 0 : index
    %c0_160 = arith.constant 0 : index
    %164 = vector.load %arg13[%c0_159, %c0_160] : memref<2048x256xbf16, #tpu.memory_space<vmem>>, vector<2048x256xbf16>
    %cst_161 = arith.constant dense<0.000000e+00> : vector<8x256xf32>
    %165 = tpu.matmul %163, %164, %cst_161 {dimension_numbers = #tpu.dot_dimension_numbers<[1], [0], [0], [1], [0, 0, 1, 1], [], []>} : vector<8x2048xbf16>, vector<2048x256xbf16>, vector<8x256xf32> -> vector<8x256xf32>
    %c0_162 = arith.constant 0 : index
    %c0_163 = arith.constant 0 : index
    %166 = vector.load %arg9[%c0_162, %c0_163] : memref<1x256xf32, #tpu.memory_space<vmem>>, vector<1x256xf32>
    %167 = vector.broadcast %166 : vector<1x256xf32> to vector<8x256xf32>
    %168 = arith.addf %165, %167 : vector<8x256xf32>
    %c0_164 = arith.constant 0 : index
    %c0_165 = arith.constant 0 : index
    %169 = vector.load %arg10[%c0_164, %c0_165] : memref<8x256xf32, #tpu.memory_space<vmem>>, vector<8x256xf32>
    tpu.vector_store %arg10[%c0_164, %c0_165], %168 {strides = array<i32>} : memref<8x256xf32, #tpu.memory_space<vmem>>, vector<8x256xf32>,
    return
  }
}

</mosaic_0001>

<bundles_post_ra>
// kernel: acnn_predictor_forward.1
= control target key start
LH: loop header
LB: loop body
LE: loop exit
PB: predicated region body
PF: predicated region fallthrough
CT: control target
= control target key end

     0   :  { %s38_s13 = sld [smem:[#allocation0]]   ;;  %s2106_s14 = smov [#allocation4]   ;;  %vm116_vm0 = vcmask 261120   ;;  %vm445_vm1 = vcmask 130048   ;;  %s2492_s0 = inlined_call_operand.vmem [shape: f32[128,32], index: 0, kind: input, shape index: {}]   ;;  %s2493_s1 = inlined_call_operand.vmem [shape: bf16[32,32], index: 1, kind: input, shape index: {}]   ;;  %s2494_s2 = inlined_call_operand.vmem [shape: f32[1,32], index: 2, kind: input, shape index: {}]   ;;  %s2495_s3 = inlined_call_operand.vmem [shape: bf16[32,16], index: 3, kind: input, shape index: {}]   ;;  %s2496_s4 = inlined_call_operand.vmem [shape: f32[1,16], index: 4, kind: input, shape index: {}]   ;;  %s2497_s5 = inlined_call_operand.vmem [shape: bf16[16,32], index: 5, kind: input, shape index: {}]   ;;  %s2498_s6 = inlined_call_operand.vmem [shape: f32[1,32], index: 6, kind: input, shape index: {}]   ;;  %s2499_s7 = inlined_call_operand.vmem [shape: s32[128,1], index: 7, kind: input, shape index: {}]   ;;  %s2500_s8 = inlined_call_operand.hbm [shape: bf16[2048,256], index: 8, kind: input, shape index: {}]   ;;  %s2501_s9 = inlined_call_operand.vmem [shape: f32[1,256], index: 9, kind: input, shape index: {}]   ;;  %s2502_s10 = inlined_call_operand.vmem [shape: f32[8,256], index: 10, kind: output, shape index: {}]  }
   0x1   :  { %s46_s15 = sshll.u32 %s2106_s14, 4  ;;  %s2107_s16 = smov 256   ;;  %s47_s15 = int_to_ptr.vmem [resolvable:$true] %s46_s15 }
   0x2   :  { %50 = sst [smem:[#allocation7]] %s2107_s16  ;;  %s2108_s17 = smov 2  }
   0x3   :  { %52 = sst [smem:[#allocation7 + $0x1]] %s2107_s16  ;;  %s2109_s18 = smov 64  }
   0x4   :  { %54 = sst [smem:[#allocation7 + $0x2]] %s2108_s17  ;;  %s2110_s20 = smov 128  }
   0x5   :  { %56 = sst [smem:[#allocation7 + $0x3]] %s2109_s18  ;;  %s2111_s22 = smov 4  }
   0x6   :  { %s1798_s19 = sshll.u32 %s38_s13, 26  ;;  %58 = sst [smem:[#allocation7 + $0x4]] %s2110_s20 }
   0x7   :  { %s1799_s21 = sadd.s32 134217728, %s1798_s19  ;;  %60 = sst [smem:[#allocation7 + $0x5]] %s2108_s17 }
   0x8   :  { %62 = sst [smem:[#allocation7 + $0x6]] %s2110_s20  ;;  %s2112_s23 = smov [#allocation5]  }
   0x9   :  { %64 = sst [smem:[#allocation7 + $0x7]] %s2109_s18  ;;  %s2113_s24 = smov [#allocation6]  }
   0xa   :  { %66 = sst [smem:[#allocation7 + $0x8]] %s2111_s22  ;;  %s2118_s14 = smov 96  }
   0xb   :  { %68 = dma.general %s2500_s8, 32768, %s47_s15, %s2112_s23, %s2113_s24, [#allocation7], %s1799_s21, 0  }
   0xc   :  { %v2099_v0 = vld [vmem:[%s2493_s1] sm:$0xff]   ;;  %v2100_v1 = vld [vmem:[%s2493_s1 + $0x8] sm:$0xff]   ;;  %v71_v5 = vld [vmem:[%s2492_s0 + $0x10] sm:$0xff] }
   0xd   :  { %1910 = vmatprep.subr.bf16.mxu0 %v2099_v0  ;;  %v69_v2 = vld [vmem:[%s2492_s0] sm:$0xff]  ;;  %v70_v3 = vld [vmem:[%s2492_s0 + $0x8] sm:$0xff]  ;;  %v72_v6 = vld [vmem:[%s2492_s0 + $0x18] sm:$0xff] }
   0xe   :  { %1911 = vmatpush3.bf16.msra.mxu0 %v2099_v0  ;;  %v85_v4 = vpack.c.bf16 %v70_v3, %v69_v2  ;;  %v73_v7 = vld [vmem:[%s2492_s0 + $0x20] sm:$0xff]  ;;  %v74_v8 = vld [vmem:[%s2492_s0 + $0x28] sm:$0xff]  ;;  %v86_v9 = vpack.c.bf16 %v72_v6, %v71_v5  ;;  %v75_v11 = vld [vmem:[%s2492_s0 + $0x30] sm:$0xff] }
   0xf   :  { %1912 = vmatprep.subr.bf16.mxu0 %v2100_v1  ;;  %v87_v10 = vpack.c.bf16 %v74_v8, %v73_v7  ;;  %v76_v12 = vld [vmem:[%s2492_s0 + $0x38] sm:$0xff]  ;;  %v77_v13 = vld [vmem:[%s2492_s0 + $0x40] sm:$0xff]  ;;  %v78_v14 = vld [vmem:[%s2492_s0 + $0x48] sm:$0xff] }
  0x10   :  { %1914 = vmatprep.mubr.msk.bf16.mxu0 %vm116_vm0, %v85_v4  ;;  %v88_v15 = vpack.c.bf16 %v76_v12, %v75_v11  ;;  %v89_v16 = vpack.c.bf16 %v78_v14, %v77_v13  ;;  %v79_v17 = vld [vmem:[%s2492_s0 + $0x50] sm:$0xff]  ;;  %v80_v18 = vld [vmem:[%s2492_s0 + $0x58] sm:$0xff]  ;;  %v81_v19 = vld [vmem:[%s2492_s0 + $0x60] sm:$0xff] }
  0x11   :  { %v82_v20 = vld [vmem:[%s2492_s0 + $0x68] sm:$0xff]  ;;  %v90_v21 = vpack.c.bf16 %v80_v18, %v79_v17  ;;  %v83_v23 = vld [vmem:[%s2492_s0 + $0x70] sm:$0xff]  ;;  %v84_v24 = vld [vmem:[%s2492_s0 + $0x78] sm:$0xff] }
  0x12   :  { %1913 = vmatpush3.bf16.msra.mxu0 %v2100_v1  ;;  %v91_v22 = vpack.c.bf16 %v82_v20, %v81_v19  ;;  %v92_v25 = vpack.c.bf16 %v84_v24, %v83_v23  ;;  %v2101_v26 = vld [vmem:[%s2495_s3] sm:$0xff]   ;;  %v2102_v27 = vld [vmem:[%s2495_s3 + $0x8] sm:$0xff]   ;;  %v2114_v23 = vmov 0   ;;  %v571_v24 = vld [vmem:[%s2499_s7 + $0x10] sm:$0xff] }
  0x13   :  { %1930 = vmatprep.subr.bf16.mxu1 %v2101_v26  ;;  %v2103_v28 = vld [vmem:[%s2497_s5] sm:$0xff]   ;;  %2097 = vset.pattern.permute.xlu0 %v2114_v23 }
  0x14   :  { %1931 = vmatpush3.bf16.msra.mxu1 %v2101_v26  ;;  %1950 = vmatprep.subr.bf16.mxu0 %v2103_v28  ;;  %v1800_v29 = vld [vmem:[%s2494_s2] ss:$0 sm:$0xff]  ;;  %v572_v26 = vld [vmem:[%s2499_s7 + $0x18] sm:$0xff] }
  0x15   :  { %1915 = vmatmul.mubr.msk.bf16.vlgmr.msra.gmra.mrb[0].mxu0 %vm116_vm0, %v86_v9  ;;  %1932 = vmatprep.subr.bf16.mxu1 %v2102_v27 }
  0x16   :  { %1918 = vmatprep.mubr.msk.bf16.mxu0 %vm116_vm0, %v87_v10  ;;  %1951 = vmatpush3.bf16.msra.mxu0 %v2103_v28  ;;  %v574_v28 = vld [vmem:[%s2499_s7 + $0x28] sm:$0xff] }
  0x17   :  { %2098 = vset.pattern.permute.xlu1 %v2114_v23 }
  0x18   :  { %1933 = vmatpush3.bf16.msra.mxu1 %v2102_v27  ;;  %592 = vperm.xlu1 %2098, %v571_v24   ;;  %v573_v27 = vld [vmem:[%s2499_s7 + $0x20] sm:$0xff] }
  0x1c   :  { %595 = vperm.xlu1 %2098, %v572_v26  }
  0x1d   :  { %1919 = vmatmul.mubr.msk.bf16.gmra.mrb[4].mxu0 %vm116_vm0, %v88_v15 }
  0x1e   :  { %1922 = vmatprep.mubr.msk.bf16.mxu0 %vm116_vm0, %v89_v16 }
  0x20   :  { %601 = vperm.xlu1 %2098, %v574_v28  }
  0x25   :  { %1923 = vmatmul.mubr.msk.bf16.gmra.mrb[8].mxu0 %vm116_vm0, %v90_v21 }
  0x26   :  { %1926 = vmatprep.mubr.msk.bf16.mxu0 %vm116_vm0, %v91_v22  ;;  %v569_v22 = vld [vmem:[%s2499_s7] sm:$0xff] }
  0x27   :  { %586 = vperm.xlu0 %2097, %v569_v22  }
  0x2d   :  { %1927 = vmatmul.mubr.msk.bf16.gmra.mrb[12].mxu0 %vm116_vm0, %v92_v25  ;;  %v570_v25 = vld [vmem:[%s2499_s7 + $0x8] sm:$0xff] }
  0x2e   :  { %589 = vperm.xlu0 %2097, %v570_v25  }
  0x32   :  { %598 = vperm.xlu0 %2097, %v573_v27  }
  0xe8   :  { %v1916_v30 = vpop.f32.mrb[0].mxu0 }
  0xe9   :  { %v184_v31 = vadd.f32 %v1916_v30, %v1800_v29  ;;  %v175_v32 = vpop.f32.mrb[1].mxu0  ;;  %v576_v30 = vld [vmem:[%s2499_s7 + $0x38] sm:$0xff] }
  0xea   :  { %v176_v33 = vadd.f32 %v1800_v29, %v175_v32  ;;  %v1917_v34 = vpop.f32.mrb[2].mxu0  ;;  %607 = vperm.xlu1 %2098, %v576_v30   ;;  %v578_v32 = vld [vmem:[%s2499_s7 + $0x48] sm:$0xff] }
  0xeb   :  { %v187_v35 = vadd.f32 %v1917_v34, %v1800_v29  ;;  %v178_v36 = vpop.f32.mrb[3].mxu0  ;;  %v240_v38 = vmax.f32 %v184_v31, 0.0  ;;  %v577_v31 = vld [vmem:[%s2499_s7 + $0x40] sm:$0xff]  ;;  %v580_v34 = vld [vmem:[%s2499_s7 + $0x58] sm:$0xff] }
  0xec   :  { %v179_v37 = vadd.f32 %v1800_v29, %v178_v36  ;;  %v238_v40 = vmax.f32 %v176_v33, 0.0  ;;  %v579_v33 = vld [vmem:[%s2499_s7 + $0x50] sm:$0xff]  ;;  %v582_v36 = vld [vmem:[%s2499_s7 + $0x68] sm:$0xff] }
  0xed   :  { %v241_v39 = vmax.f32 %v187_v35, 0.0  ;;  %v581_v35 = vld [vmem:[%s2499_s7 + $0x60] sm:$0xff] }
  0xee   :  { %v239_v41 = vmax.f32 %v179_v37, 0.0  ;;  %613 = vperm.xlu1 %2098, %v578_v32   ;;  %v583_v37 = vld [vmem:[%s2499_s7 + $0x70] sm:$0xff]  ;;  %v567_v32 = vlaneseq }
  0xef   :  { %v255_v42 = vpack.c.bf16 %v241_v39, %v240_v38  ;;  %v584_v38 = vld [vmem:[%s2499_s7 + $0x78] sm:$0xff]  ;;  %v1811_v39 = vld [vmem:[%s2496_s4] ss:$0 sm:$0xff] }
  0xf0   :  { %v1920_v43 = vpop.f32.mrb[4].mxu0  ;;  %v254_v44 = vpack.c.bf16 %v239_v41, %v238_v40 }
  0xf1   :  { %v200_v45 = vadd.f32 %v1920_v43, %v1800_v29  ;;  %v191_v46 = vpop.f32.mrb[5].mxu0 }
  0xf2   :  { %v192_v47 = vadd.f32 %v1800_v29, %v191_v46  ;;  %v1921_v48 = vpop.f32.mrb[6].mxu0  ;;  %1934 = vmatprep.mubr.msk.bf16.mxu1 %vm116_vm0, %v254_v44  ;;  %619 = vperm.xlu1 %2098, %v580_v34   ;;  %v587_v34 = vpop.permute.xlu0 %586 }
  0xf3   :  { %v203_v49 = vadd.f32 %v1921_v48, %v1800_v29  ;;  %v194_v50 = vpop.f32.mrb[7].mxu0  ;;  %1935 = vmatmul.mubr.msk.bf16.vlgmr.msra.gmra.mrb[0].mxu1 %vm116_vm0, %v255_v42  ;;  %v244_v52 = vmax.f32 %v200_v45, 0.0 }
  0xf4   :  { %v195_v51 = vadd.f32 %v1800_v29, %v194_v50  ;;  %v242_v54 = vmax.f32 %v192_v47, 0.0 }
  0xf5   :  { %v245_v53 = vmax.f32 %v203_v49, 0.0 }
  0xf6   :  { %v243_v55 = vmax.f32 %v195_v51, 0.0  ;;  %625 = vperm.xlu1 %2098, %v582_v36  }
  0xf7   :  { %v257_v56 = vpack.c.bf16 %v245_v53, %v244_v52 }
  0xf8   :  { %v256_v57 = vpack.c.bf16 %v243_v55, %v242_v54  ;;  %v1924_v58 = vpop.f32.mrb[8].mxu0 }
  0xf9   :  { %v216_v59 = vadd.f32 %v1924_v58, %v1800_v29  ;;  %v207_v60 = vpop.f32.mrb[9].mxu0 }
  0xfa   :  { %v208_v61 = vadd.f32 %v1800_v29, %v207_v60  ;;  %v1925_v62 = vpop.f32.mrb[10].mxu0  ;;  %1938 = vmatprep.mubr.msk.bf16.mxu1 %vm116_vm0, %v256_v57  ;;  %631 = vperm.xlu1 %2098, %v584_v38  }
  0xfb   :  { %v219_v63 = vadd.f32 %v1925_v62, %v1800_v29  ;;  %v210_v0 = vpop.f32.mrb[11].mxu0  ;;  %1939 = vmatmul.mubr.msk.bf16.gmra.mrb[4].mxu1 %vm116_vm0, %v257_v56  ;;  %v248_v2 = vmax.f32 %v216_v59, 0.0 }
  0xfc   :  { %v211_v1 = vadd.f32 %v1800_v29, %v210_v0  ;;  %v246_v4 = vmax.f32 %v208_v61, 0.0 }
  0xfd   :  { %v249_v3 = vmax.f32 %v219_v63, 0.0 }
  0xfe   :  { %v247_v5 = vmax.f32 %v211_v1, 0.0 }
  0xff   :  { %v259_v6 = vpack.c.bf16 %v249_v3, %v248_v2 }
 0x100   :  { %v258_v7 = vpack.c.bf16 %v247_v5, %v246_v4  ;;  %v1928_v8 = vpop.f32.mrb[12].mxu0 }
 0x101   :  { %v232_v9 = vadd.f32 %v1928_v8, %v1800_v29  ;;  %v223_v10 = vpop.f32.mrb[13].mxu0 }
 0x102   :  { %v224_v11 = vadd.f32 %v1800_v29, %v223_v10  ;;  %v1929_v12 = vpop.f32.mrb[14].mxu0  ;;  %1942 = vmatprep.mubr.msk.bf16.mxu1 %vm116_vm0, %v258_v7 }
 0x103   :  { %v235_v13 = vadd.f32 %v1929_v12, %v1800_v29  ;;  %v226_v14 = vpop.f32.mrb[15].mxu0  ;;  %1943 = vmatmul.mubr.msk.bf16.gmra.mrb[8].mxu1 %vm116_vm0, %v259_v6  ;;  %v252_v16 = vmax.f32 %v232_v9, 0.0 }
 0x104   :  { %v227_v15 = vadd.f32 %v1800_v29, %v226_v14  ;;  %v250_v18 = vmax.f32 %v224_v11, 0.0  ;;  %v575_v29 = vld [vmem:[%s2499_s7 + $0x30] sm:$0xff] }
 0x105   :  { %v253_v17 = vmax.f32 %v235_v13, 0.0  ;;  %604 = vperm.xlu0 %2097, %v575_v29  }
 0x106   :  { %v251_v19 = vmax.f32 %v227_v15, 0.0 }
 0x107   :  { %v261_v20 = vpack.c.bf16 %v253_v17, %v252_v16 }
 0x108   :  { %v260_v21 = vpack.c.bf16 %v251_v19, %v250_v18 }
 0x109   :  { %610 = vperm.xlu0 %2097, %v577_v31  }
 0x10a   :  { %1946 = vmatprep.mubr.msk.bf16.mxu1 %vm116_vm0, %v260_v21 }
 0x10b   :  { %1947 = vmatmul.mubr.msk.bf16.gmra.mrb[12].mxu1 %vm116_vm0, %v261_v20 }
 0x10d   :  { %616 = vperm.xlu0 %2097, %v579_v33   ;;  %v2321_v33 = vand.u32 127, %v567_v32 }
 0x10f   :  { %vm633_vm2 = vcmp.eq.s32.totalorder %v587_v34, %v2321_v33 }
 0x111   :  { %622 = vperm.xlu0 %2097, %v581_v35   ;;  %v2115_v35 = vmov 1.0  }
 0x112   :  { %2000 = vmatprep.mubr.msk.f32.mxu1 %vm633_vm2, %v2115_v35 }
 0x115   :  { %628 = vperm.xlu0 %2097, %v583_v37   ;;  %v1822_v37 = vld [vmem:[%s2498_s6] ss:$0 sm:$0xff]  ;;  %s2117_s6 = smov 32  }
 0x1c6   :  { %v1936_v40 = vpop.f32.mrb[0].mxu1 }
 0x1c7   :  { %v352_v41 = vadd.f32 %v1936_v40, %v1811_v39  ;;  %v343_v42 = vpop.f32.mrb[1].mxu1 }
 0x1c8   :  { %v344_v43 = vadd.f32 %v1811_v39, %v343_v42  ;;  %v1937_v44 = vpop.f32.mrb[2].mxu1 }
 0x1c9   :  { %v355_v45 = vadd.f32 %v1937_v44, %v1811_v39  ;;  %v346_v46 = vpop.f32.mrb[3].mxu1  ;;  %v408_v48 = vmax.f32 %v352_v41, 0.0 }
 0x1ca   :  { %v347_v47 = vadd.f32 %v1811_v39, %v346_v46  ;;  %v406_v50 = vmax.f32 %v344_v43, 0.0 }
 0x1cb   :  { %v409_v49 = vmax.f32 %v355_v45, 0.0 }
 0x1cc   :  { %v407_v51 = vmax.f32 %v347_v47, 0.0 }
 0x1cd   :  { %v423_v52 = vpack.c.bf16 %v409_v49, %v408_v48 }
 0x1ce   :  { %v422_v53 = vpack.c.bf16 %v407_v51, %v406_v50  ;;  %v1940_v54 = vpop.f32.mrb[4].mxu1 }
 0x1cf   :  { %v368_v55 = vadd.f32 %v1940_v54, %v1811_v39  ;;  %v359_v56 = vpop.f32.mrb[5].mxu1 }
 0x1d0   :  { %v360_v57 = vadd.f32 %v1811_v39, %v359_v56  ;;  %v1941_v58 = vpop.f32.mrb[6].mxu1  ;;  %1952 = vmatprep.mubr.msk.bf16.mxu0 %vm445_vm1, %v422_v53 }
 0x1d1   :  { %v371_v59 = vadd.f32 %v1941_v58, %v1811_v39  ;;  %v362_v60 = vpop.f32.mrb[7].mxu1  ;;  %1953 = vmatmul.mubr.msk.bf16.vlgmr.msra.gmra.mrb[16].mxu0 %vm445_vm1, %v423_v52  ;;  %v412_v62 = vmax.f32 %v368_v55, 0.0 }
 0x1d2   :  { %v363_v61 = vadd.f32 %v1811_v39, %v362_v60  ;;  %v410_v0 = vmax.f32 %v360_v57, 0.0 }
 0x1d3   :  { %v413_v63 = vmax.f32 %v371_v59, 0.0 }
 0x1d4   :  { %v411_v1 = vmax.f32 %v363_v61, 0.0 }
 0x1d5   :  { %v425_v2 = vpack.c.bf16 %v413_v63, %v412_v62 }
 0x1d6   :  { %v424_v3 = vpack.c.bf16 %v411_v1, %v410_v0  ;;  %v1944_v4 = vpop.f32.mrb[8].mxu1 }
 0x1d7   :  { %v384_v5 = vadd.f32 %v1944_v4, %v1811_v39  ;;  %v375_v6 = vpop.f32.mrb[9].mxu1 }
 0x1d8   :  { %v376_v7 = vadd.f32 %v1811_v39, %v375_v6  ;;  %v1945_v8 = vpop.f32.mrb[10].mxu1  ;;  %1956 = vmatprep.mubr.msk.bf16.mxu0 %vm445_vm1, %v424_v3 }
 0x1d9   :  { %v387_v9 = vadd.f32 %v1945_v8, %v1811_v39  ;;  %v378_v10 = vpop.f32.mrb[11].mxu1  ;;  %1957 = vmatmul.mubr.msk.bf16.gmra.mrb[20].mxu0 %vm445_vm1, %v425_v2  ;;  %v416_v12 = vmax.f32 %v384_v5, 0.0  ;;  %v593_v2 = vpop.permute.xlu1 %592 }
 0x1da   :  { %v379_v11 = vadd.f32 %v1811_v39, %v378_v10  ;;  %v414_v14 = vmax.f32 %v376_v7, 0.0  ;;  %v590_v5 = vpop.permute.xlu0 %589  ;;  %vm635_vm3 = vcmp.eq.s32.totalorder %v593_v2, %v2321_v33 }
 0x1db   :  { %v417_v13 = vmax.f32 %v387_v9, 0.0  ;;  %vm634_vm4 = vcmp.eq.s32.totalorder %v590_v5, %v2321_v33 }
 0x1dc   :  { %v415_v15 = vmax.f32 %v379_v11, 0.0 }
 0x1dd   :  { %v427_v16 = vpack.c.bf16 %v417_v13, %v416_v12  ;;  %v596_v11 = vpop.permute.xlu1 %595 }
 0x1de   :  { %v426_v17 = vpack.c.bf16 %v415_v15, %v414_v14  ;;  %v1948_v18 = vpop.f32.mrb[12].mxu1  ;;  %vm636_vm5 = vcmp.eq.s32.totalorder %v596_v11, %v2321_v33 }
 0x1df   :  { %v400_v19 = vadd.f32 %v1948_v18, %v1811_v39  ;;  %v391_v20 = vpop.f32.mrb[13].mxu1 }
 0x1e0   :  { %v392_v21 = vadd.f32 %v1811_v39, %v391_v20  ;;  %v1949_v22 = vpop.f32.mrb[14].mxu1  ;;  %1960 = vmatprep.mubr.msk.bf16.mxu0 %vm445_vm1, %v426_v17 }
 0x1e1   :  { %v403_v23 = vadd.f32 %v1949_v22, %v1811_v39  ;;  %v394_v24 = vpop.f32.mrb[15].mxu1  ;;  %1961 = vmatmul.mubr.msk.bf16.gmra.mrb[24].mxu0 %vm445_vm1, %v427_v16  ;;  %v420_v26 = vmax.f32 %v400_v19, 0.0  ;;  %v599_v16 = vpop.permute.xlu0 %598 }
 0x1e2   :  { %v395_v25 = vadd.f32 %v1811_v39, %v394_v24  ;;  %v418_v28 = vmax.f32 %v392_v21, 0.0  ;;  %v602_v17 = vpop.permute.xlu1 %601  ;;  %vm637_vm6 = vcmp.eq.s32.totalorder %v599_v16, %v2321_v33 }
 0x1e3   :  { %v421_v27 = vmax.f32 %v403_v23, 0.0  ;;  %vm638_vm7 = vcmp.eq.s32.totalorder %v602_v17, %v2321_v33 }
 0x1e4   :  { %v419_v29 = vmax.f32 %v395_v25, 0.0 }
 0x1e5   :  { %v429_v30 = vpack.c.bf16 %v421_v27, %v420_v26  ;;  %v605_v18 = vpop.permute.xlu0 %604 }
 0x1e6   :  { %v428_v31 = vpack.c.bf16 %v419_v29, %v418_v28  ;;  %v608_v19 = vpop.permute.xlu1 %607  ;;  %vm639_vm8 = vcmp.eq.s32.totalorder %v605_v18, %v2321_v33  ;;  %v2116_v28 = vmov 0.0  }
 0x1e7   :  { %vm640_vm9 = vcmp.eq.s32.totalorder %v608_v19, %v2321_v33  ;;  %827 = vst [vmem:[#allocation3 + $0x8] sm:$0xff] %v2116_v28  ;;  %826 = vst [vmem:[#allocation3] sm:$0xff] %v2116_v28 }
 0x1e8   :  { %1964 = vmatprep.mubr.msk.bf16.mxu0 %vm445_vm1, %v428_v31  ;;  %828 = vst [vmem:[#allocation3 + $0x10] sm:$0xff] %v2116_v28  ;;  %829 = vst [vmem:[#allocation3 + $0x18] sm:$0xff] %v2116_v28 }
 0x1e9   :  { %1965 = vmatmul.mubr.msk.bf16.gmra.mrb[28].mxu0 %vm445_vm1, %v429_v30  ;;  %v611_v20 = vpop.permute.xlu0 %610  ;;  %830 = vst [vmem:[#allocation3 + $0x20] sm:$0xff] %v2116_v28  ;;  %831 = vst [vmem:[#allocation3 + $0x28] sm:$0xff] %v2116_v28 }
 0x1ea   :  { %v614_v21 = vpop.permute.xlu1 %613  ;;  %vm641_vm10 = vcmp.eq.s32.totalorder %v611_v20, %v2321_v33  ;;  %832 = vst [vmem:[#allocation3 + $0x30] sm:$0xff] %v2116_v28  ;;  %833 = vst [vmem:[#allocation3 + $0x38] sm:$0xff] %v2116_v28 }
 0x1eb   :  { %vm642_vm11 = vcmp.eq.s32.totalorder %v614_v21, %v2321_v33  ;;  %834 = vst [vmem:[#allocation3 + $0x40] sm:$0xff] %v2116_v28  ;;  %835 = vst [vmem:[#allocation3 + $0x48] sm:$0xff] %v2116_v28 }
 0x1ec   :  { %836 = vst [vmem:[#allocation3 + $0x50] sm:$0xff] %v2116_v28  ;;  %837 = vst [vmem:[#allocation3 + $0x58] sm:$0xff] %v2116_v28 }
 0x1ed   :  { %v617_v22 = vpop.permute.xlu0 %616  ;;  %838 = vst [vmem:[#allocation3 + $0x60] sm:$0xff] %v2116_v28  ;;  %839 = vst [vmem:[#allocation3 + $0x68] sm:$0xff] %v2116_v28 }
 0x1ee   :  { %v620_v23 = vpop.permute.xlu1 %619  ;;  %vm643_vm12 = vcmp.eq.s32.totalorder %v617_v22, %v2321_v33  ;;  %840 = vst [vmem:[#allocation3 + $0x70] sm:$0xff] %v2116_v28  ;;  %841 = vst [vmem:[#allocation3 + $0x78] sm:$0xff] %v2116_v28 }
 0x1ef   :  { %vm644_vm13 = vcmp.eq.s32.totalorder %v620_v23, %v2321_v33 }
 0x1f1   :  { %v623_v24 = vpop.permute.xlu0 %622 }
 0x1f2   :  { %v626_v25 = vpop.permute.xlu1 %625  ;;  %vm645_vm14 = vcmp.eq.s32.totalorder %v623_v24, %v2321_v33 }
 0x1f3   :  { %vm646_vm15 = vcmp.eq.s32.totalorder %v626_v25, %v2321_v33 }
 0x1f5   :  { %v629_v26 = vpop.permute.xlu0 %628 }
 0x1f6   :  { %vm647_vm1 = vcmp.eq.s32.totalorder %v629_v26, %v2321_v33  ;;  %v632_v27 = vpop.permute.xlu1 %631 }
 0x1f7   :  { %vm648_vm2 = vcmp.eq.s32.totalorder %v632_v27, %v2321_v33 }
 0x2a4   :  { %v1954_v36 = vpop.f32.mrb[16].mxu0 }
 0x2a5   :  { %v504_v38 = vpop.f32.mrb[17].mxu0  ;;  %v513_v40 = vadd.f32 %v1954_v36, %v1822_v37 }
 0x2a6   :  { %v1955_v39 = vpop.f32.mrb[18].mxu0  ;;  %v505_v43 = vadd.f32 %v1822_v37, %v504_v38 }
 0x2a7   :  { %v516_v41 = vadd.f32 %v1955_v39, %v1822_v37  ;;  %v507_v42 = vpop.f32.mrb[19].mxu0 }
 0x2a8   :  { %v508_v44 = vadd.f32 %v1822_v37, %v507_v42 }
 0x2a9   :  { %v2028_v45 = vpack.c.bf16 %v516_v41, %v513_v40 }
 0x2aa   :  { %v2024_v46 = vpack.c.bf16 %v508_v44, %v505_v43 }
 0x2ac   :  { %v1958_v47 = vpop.f32.mrb[20].mxu0  ;;  %2025 = vmatprep.subr.bf16.mxu1 %v2024_v46 }
 0x2ad   :  { %v520_v48 = vpop.f32.mrb[21].mxu0  ;;  %2027 = vmatpush3.bf16.msra.mxu1 %v2024_v46  ;;  %v529_v50 = vadd.f32 %v1958_v47, %v1822_v37 }
 0x2ae   :  { %v1959_v49 = vpop.f32.mrb[22].mxu0  ;;  %2029 = vmatprep.subr.bf16.mxu1 %v2028_v45  ;;  %v521_v53 = vadd.f32 %v1822_v37, %v520_v48 }
 0x2af   :  { %v532_v51 = vadd.f32 %v1959_v49, %v1822_v37  ;;  %v523_v52 = vpop.f32.mrb[23].mxu0 }
 0x2b0   :  { %v524_v54 = vadd.f32 %v1822_v37, %v523_v52 }
 0x2b1   :  { %v2036_v55 = vpack.c.bf16 %v532_v51, %v529_v50  ;;  %2031 = vmatpush3.bf16.msra.mxu1 %v2028_v45 }
 0x2b2   :  { %v2032_v56 = vpack.c.bf16 %v524_v54, %v521_v53 }
 0x2b4   :  { %v1962_v57 = vpop.f32.mrb[24].mxu0  ;;  %2033 = vmatprep.subr.bf16.mxu1 %v2032_v56 }
 0x2b5   :  { %v536_v58 = vpop.f32.mrb[25].mxu0  ;;  %2035 = vmatpush3.bf16.msra.mxu1 %v2032_v56  ;;  %v545_v60 = vadd.f32 %v1962_v57, %v1822_v37 }
 0x2b6   :  { %v1963_v59 = vpop.f32.mrb[26].mxu0  ;;  %2037 = vmatprep.subr.bf16.mxu1 %v2036_v55  ;;  %v537_v63 = vadd.f32 %v1822_v37, %v536_v58 }
 0x2b7   :  { %v548_v61 = vadd.f32 %v1963_v59, %v1822_v37  ;;  %v539_v62 = vpop.f32.mrb[27].mxu0 }
 0x2b8   :  { %v540_v0 = vadd.f32 %v1822_v37, %v539_v62 }
 0x2b9   :  { %v2044_v1 = vpack.c.bf16 %v548_v61, %v545_v60  ;;  %2039 = vmatpush3.bf16.msra.mxu1 %v2036_v55 }
 0x2ba   :  { %v2040_v3 = vpack.c.bf16 %v540_v0, %v537_v63 }
 0x2bc   :  { %v1966_v4 = vpop.f32.mrb[28].mxu0  ;;  %2041 = vmatprep.subr.bf16.mxu1 %v2040_v3 }
 0x2bd   :  { %v552_v6 = vpop.f32.mrb[29].mxu0  ;;  %2043 = vmatpush3.bf16.msra.mxu1 %v2040_v3  ;;  %v561_v8 = vadd.f32 %v1966_v4, %v1822_v37 }
 0x2be   :  { %v1967_v7 = vpop.f32.mrb[30].mxu0  ;;  %2045 = vmatprep.subr.bf16.mxu1 %v2044_v1  ;;  %v553_v12 = vadd.f32 %v1822_v37, %v552_v6 }
 0x2bf   :  { %v564_v9 = vadd.f32 %v1967_v7, %v1822_v37  ;;  %v555_v10 = vpop.f32.mrb[31].mxu0 }
 0x2c0   :  { %v556_v13 = vadd.f32 %v1822_v37, %v555_v10 }
 0x2c1   :  { %v2052_v14 = vpack.c.bf16 %v564_v9, %v561_v8  ;;  %2047 = vmatpush3.bf16.msra.mxu1 %v2044_v1 }
 0x2c2   :  { %v2048_v15 = vpack.c.bf16 %v556_v13, %v553_v12 }
 0x2c4   :  { %2049 = vmatprep.subr.bf16.mxu1 %v2048_v15 }
 0x2c5   :  { %2051 = vmatpush3.bf16.msra.mxu1 %v2048_v15 }
 0x2c6   :  { %2053 = vmatprep.subr.bf16.mxu1 %v2052_v14 }
 0x2c9   :  { %2055 = vmatpush3.bf16.msra.mxu1 %v2052_v14 }
 0x2cc   :  { %2001 = vmatmul.mubr.msk.f32.vlgmr.msra.gmra.mrb[16].mxu1 %vm634_vm4, %v2115_v35  ;;  %vm857_vm4 = vcmask 779776  }
 0x2cd   :  { %2003 = vmatprep.mubr.msk.f32.mxu1 %vm635_vm3, %v2115_v35  ;;  %vm843_vm3 = vcmask 254976  }
 0x2d0   :  { %2004 = vmatmul.mubr.msk.f32.gmra.mrb[18].mxu1 %vm636_vm5, %v2115_v35  ;;  %vm864_vm5 = vcmask 1042176  }
 0x2d1   :  { %2006 = vmatprep.mubr.msk.f32.mxu1 %vm637_vm6, %v2115_v35 }
 0x2d4   :  { %2007 = vmatmul.mubr.msk.f32.gmra.mrb[20].mxu1 %vm638_vm7, %v2115_v35 }
 0x2d5   :  { %2009 = vmatprep.mubr.msk.f32.mxu1 %vm639_vm8, %v2115_v35 }
 0x2d8   :  { %2010 = vmatmul.mubr.msk.f32.gmra.mrb[22].mxu1 %vm640_vm9, %v2115_v35 }
 0x2d9   :  { %2012 = vmatprep.mubr.msk.f32.mxu1 %vm641_vm10, %v2115_v35 }
 0x2dc   :  { %2013 = vmatmul.mubr.msk.f32.gmra.mrb[24].mxu1 %vm642_vm11, %v2115_v35 }
 0x2dd   :  { %2015 = vmatprep.mubr.msk.f32.mxu1 %vm643_vm12, %v2115_v35 }
 0x2e0   :  { %2016 = vmatmul.mubr.msk.f32.gmra.mrb[26].mxu1 %vm644_vm13, %v2115_v35 }
 0x2e1   :  { %2018 = vmatprep.mubr.msk.f32.mxu1 %vm645_vm14, %v2115_v35 }
 0x2e4   :  { %2019 = vmatmul.mubr.msk.f32.gmra.mrb[28].mxu1 %vm646_vm15, %v2115_v35 }
 0x2e5   :  { %2021 = vmatprep.mubr.msk.f32.mxu1 %vm647_vm1, %v2115_v35 }
 0x2e8   :  { %2022 = vmatmul.mubr.msk.f32.gmra.mrb[30].mxu1 %vm648_vm2, %v2115_v35 }
 0x39f   :  { %v2002_v29 = vpop.f32.mrb[16].mxu1 }
 0x3a0   :  { %811 = vst.msk [vmem:[#allocation2 + $0x8] sm:$0xff] %vm116_vm0, %v2002_v29  ;;  %v731_v30 = vpop.f32.mrb[17].mxu1 }
 0x3a1   :  { %810 = vst.msk [vmem:[#allocation2] sm:$0xff] %vm116_vm0, %v731_v30 }
 0x3a3   :  { %v2005_v31 = vpop.f32.mrb[18].mxu1 }
 0x3a4   :  { %813 = vst.msk [vmem:[#allocation2 + $0x18] sm:$0xff] %vm116_vm0, %v2005_v31  ;;  %v741_v33 = vpop.f32.mrb[19].mxu1 }
 0x3a5   :  { %812 = vst.msk [vmem:[#allocation2 + $0x10] sm:$0xff] %vm116_vm0, %v741_v33 }
 0x3a7   :  { %v2008_v34 = vpop.f32.mrb[20].mxu1  ;;  %v874_v35 = vld [vmem:[#allocation2 + $0xc] sm:$0x3]  ;;  %v868_v36 = vld [vmem:[#allocation2 + $0xa] sm:$0x3] }
 0x3a8   :  { %815 = vst.msk [vmem:[#allocation2 + $0x28] sm:$0xff] %vm116_vm0, %v2008_v34  ;;  %876 = vrot.lane.b32.xlu0 %v874_v35, %s2109_s18  ;;  %870 = vrot.lane.b32.xlu1 %v868_v36, %s2117_s6  ;;  %v751_v37 = vpop.f32.mrb[21].mxu1  ;;  %v866_v38 = vld [vmem:[#allocation2 + $0x8] sm:$0x3]  ;;  %v842_v39 = vld [vmem:[#allocation2] sm:$0x3] }
 0x3a9   :  { %814 = vst.msk [vmem:[#allocation2 + $0x20] sm:$0xff] %vm116_vm0, %v751_v37  ;;  %v880_v41 = vld [vmem:[#allocation2 + $0xe] sm:$0x3]  ;;  %v845_v42 = vld [vmem:[#allocation2 + $0x2] sm:$0x3] }
 0x3aa   :  { %867 = vst.msk [vmem:[#allocation3 + $0x8] sm:$0x3] %vm843_vm3, %v866_v38  ;;  %844 = vst.msk [vmem:[#allocation3] sm:$0x3] %vm843_vm3, %v842_v39  ;;  %v852_v47 = vld [vmem:[#allocation2 + $0x4] sm:$0x3] }
 0x3ab   :  { %v2011_v40 = vpop.f32.mrb[22].mxu1  ;;  %v906_v44 = vld [vmem:[#allocation2 + $0x18] sm:$0x3]  ;;  %v859_v48 = vld [vmem:[#allocation2 + $0x6] sm:$0x3] }
 0x3ac   :  { %817 = vst.msk [vmem:[#allocation2 + $0x38] sm:$0xff] %vm116_vm0, %v2011_v40  ;;  %882 = vrot.lane.b32.xlu1 %v880_v41, %s2118_s14  ;;  %847 = vrot.lane.b32.xlu0 %v845_v42, %s2117_s6  ;;  %v761_v43 = vpop.f32.mrb[23].mxu1  ;;  %v886_v45 = vld [vmem:[#allocation2 + $0x10] sm:$0x3]  ;;  %v914_v53 = vld [vmem:[#allocation2 + $0x1c] sm:$0x3] }
 0x3ad   :  { %816 = vst.msk [vmem:[#allocation2 + $0x30] sm:$0xff] %vm116_vm0, %v761_v43  ;;  %v908_v54 = vld [vmem:[#allocation2 + $0x1a] sm:$0x3]  ;;  %v920_v59 = vld [vmem:[#allocation2 + $0x1e] sm:$0x3] }
 0x3ae   :  { %907 = vst.msk [vmem:[#allocation3 + $0x18] sm:$0x3] %vm843_vm3, %v906_v44  ;;  %887 = vst.msk [vmem:[#allocation3 + $0x10] sm:$0x3] %vm843_vm3, %v886_v45  ;;  %v888_v60 = vld [vmem:[#allocation2 + $0x12] sm:$0x3] }
 0x3af   :  { %v2014_v46 = vpop.f32.mrb[24].mxu1  ;;  %v946_v50 = vld [vmem:[#allocation2 + $0x28] sm:$0x3]  ;;  %v894_v1 = vld [vmem:[#allocation2 + $0x14] sm:$0x3] }
 0x3b0   :  { %819 = vst.msk [vmem:[#allocation2 + $0x48] sm:$0xff] %vm116_vm0, %v2014_v46  ;;  %854 = vrot.lane.b32.xlu1 %v852_v47, %s2109_s18  ;;  %861 = vrot.lane.b32.xlu0 %v859_v48, %s2118_s14  ;;  %v771_v49 = vpop.f32.mrb[25].mxu1  ;;  %v926_v51 = vld [vmem:[#allocation2 + $0x20] sm:$0x3]  ;;  %v900_v2 = vld [vmem:[#allocation2 + $0x16] sm:$0x3] }
 0x3b1   :  { %818 = vst.msk [vmem:[#allocation2 + $0x40] sm:$0xff] %vm116_vm0, %v771_v49  ;;  %v948_v6 = vld [vmem:[#allocation2 + $0x2a] sm:$0x3]  ;;  %v928_v7 = vld [vmem:[#allocation2 + $0x22] sm:$0x3] }
 0x3b2   :  { %947 = vst.msk [vmem:[#allocation3 + $0x28] sm:$0x3] %vm843_vm3, %v946_v50  ;;  %927 = vst.msk [vmem:[#allocation3 + $0x20] sm:$0x3] %vm843_vm3, %v926_v51  ;;  %v954_v10 = vld [vmem:[#allocation2 + $0x2c] sm:$0x3] }
 0x3b3   :  { %v2017_v52 = vpop.f32.mrb[26].mxu1  ;;  %v986_v57 = vld [vmem:[#allocation2 + $0x38] sm:$0x3]  ;;  %v940_v11 = vld [vmem:[#allocation2 + $0x26] sm:$0x3] }
 0x3b4   :  { %821 = vst.msk [vmem:[#allocation2 + $0x58] sm:$0xff] %vm116_vm0, %v2017_v52  ;;  %916 = vrot.lane.b32.xlu0 %v914_v53, %s2109_s18  ;;  %910 = vrot.lane.b32.xlu1 %v908_v54, %s2117_s6  ;;  %v781_v55 = vpop.f32.mrb[27].mxu1  ;;  %v966_v56 = vld [vmem:[#allocation2 + $0x30] sm:$0x3]  ;;  %v960_v14 = vld [vmem:[#allocation2 + $0x2e] sm:$0x3] }
 0x3b5   :  { %820 = vst.msk [vmem:[#allocation2 + $0x50] sm:$0xff] %vm116_vm0, %v781_v55  ;;  %v968_v15 = vld [vmem:[#allocation2 + $0x32] sm:$0x3]  ;;  %v934_v16 = vld [vmem:[#allocation2 + $0x24] sm:$0x3] }
 0x3b6   :  { %967 = vst.msk [vmem:[#allocation3 + $0x30] sm:$0x3] %vm843_vm3, %v966_v56  ;;  %987 = vst.msk [vmem:[#allocation3 + $0x38] sm:$0x3] %vm843_vm3, %v986_v57  ;;  %v974_v17 = vld [vmem:[#allocation2 + $0x34] sm:$0x3] }
 0x3b7   :  { %v2020_v58 = vpop.f32.mrb[28].mxu1  ;;  %v1026_v63 = vld [vmem:[#allocation2 + $0x48] sm:$0x3]  ;;  %v988_v18 = vld [vmem:[#allocation2 + $0x3a] sm:$0x3] }
 0x3b8   :  { %823 = vst.msk [vmem:[#allocation2 + $0x68] sm:$0xff] %vm116_vm0, %v2020_v58  ;;  %922 = vrot.lane.b32.xlu1 %v920_v59, %s2118_s14  ;;  %890 = vrot.lane.b32.xlu0 %v888_v60, %s2117_s6  ;;  %v791_v61 = vpop.f32.mrb[29].mxu1  ;;  %v1006_v62 = vld [vmem:[#allocation2 + $0x40] sm:$0x3]  ;;  %v980_v19 = vld [vmem:[#allocation2 + $0x36] sm:$0x3] }
 0x3b9   :  { %822 = vst.msk [vmem:[#allocation2 + $0x60] sm:$0xff] %vm116_vm0, %v791_v61  ;;  %v994_v20 = vld [vmem:[#allocation2 + $0x3c] sm:$0x3]  ;;  %v1008_v21 = vld [vmem:[#allocation2 + $0x42] sm:$0x3] }
 0x3ba   :  { %1007 = vst.msk [vmem:[#allocation3 + $0x40] sm:$0x3] %vm843_vm3, %v1006_v62  ;;  %1027 = vst.msk [vmem:[#allocation3 + $0x48] sm:$0x3] %vm843_vm3, %v1026_v63  ;;  %v1000_v22 = vld [vmem:[#allocation2 + $0x3e] sm:$0x3] }
 0x3bb   :  { %v2023_v0 = vpop.f32.mrb[30].mxu1  ;;  %v1066_v5 = vld [vmem:[#allocation2 + $0x58] sm:$0x3]  ;;  %v1014_v23 = vld [vmem:[#allocation2 + $0x44] sm:$0x3] }
 0x3bc   :  { %825 = vst.msk [vmem:[#allocation2 + $0x78] sm:$0xff] %vm116_vm0, %v2023_v0  ;;  %896 = vrot.lane.b32.xlu1 %v894_v1, %s2109_s18  ;;  %902 = vrot.lane.b32.xlu0 %v900_v2, %s2118_s14  ;;  %v801_v3 = vpop.f32.mrb[31].mxu1  ;;  %v1046_v4 = vld [vmem:[#allocation2 + $0x50] sm:$0x3]  ;;  %v1028_v24 = vld [vmem:[#allocation2 + $0x4a] sm:$0x3] }
 0x3bd   :  { %824 = vst.msk [vmem:[#allocation2 + $0x70] sm:$0xff] %vm116_vm0, %v801_v3  ;;  %v1020_v25 = vld [vmem:[#allocation2 + $0x46] sm:$0x3]  ;;  %v1034_v26 = vld [vmem:[#allocation2 + $0x4c] sm:$0x3]  ;;  %vm850_vm0 = vcmask 517376  }
 0x3be   :  { %1047 = vst.msk [vmem:[#allocation3 + $0x50] sm:$0x3] %vm843_vm3, %v1046_v4  ;;  %1067 = vst.msk [vmem:[#allocation3 + $0x58] sm:$0x3] %vm843_vm3, %v1066_v5  ;;  %v1048_v27 = vld [vmem:[#allocation2 + $0x52] sm:$0x3] }
 0x3bf   :  { %v1106_v9 = vld [vmem:[#allocation2 + $0x68] sm:$0x3]  ;;  %v1040_v28 = vld [vmem:[#allocation2 + $0x4e] sm:$0x3]  ;;  %v1054_v29 = vld [vmem:[#allocation2 + $0x54] sm:$0x3] }
 0x3c0   :  { %950 = vrot.lane.b32.xlu1 %v948_v6, %s2117_s6  ;;  %930 = vrot.lane.b32.xlu0 %v928_v7, %s2117_s6  ;;  %v1086_v8 = vld [vmem:[#allocation2 + $0x60] sm:$0x3]  ;;  %1107 = vst.msk [vmem:[#allocation3 + $0x68] sm:$0x3] %vm843_vm3, %v1106_v9  ;;  %v1068_v30 = vld [vmem:[#allocation2 + $0x5a] sm:$0x3] }
 0x3c1   :  { %1087 = vst.msk [vmem:[#allocation3 + $0x60] sm:$0x3] %vm843_vm3, %v1086_v8  ;;  %v1060_v31 = vld [vmem:[#allocation2 + $0x56] sm:$0x3]  ;;  %v1074_v33 = vld [vmem:[#allocation2 + $0x5c] sm:$0x3] }
 0x3c2   :  { %v1088_v34 = vld [vmem:[#allocation2 + $0x62] sm:$0x3]  ;;  %v1080_v35 = vld [vmem:[#allocation2 + $0x5e] sm:$0x3]  ;;  %v1094_v36 = vld [vmem:[#allocation2 + $0x64] sm:$0x3] }
 0x3c3   :  { %v1146_v12 = vld [vmem:[#allocation2 + $0x78] sm:$0x3]  ;;  %v1108_v37 = vld [vmem:[#allocation2 + $0x6a] sm:$0x3]  ;;  %v1100_v38 = vld [vmem:[#allocation2 + $0x66] sm:$0x3] }
 0x3c4   :  { %956 = vrot.lane.b32.xlu1 %v954_v10, %s2109_s18  ;;  %942 = vrot.lane.b32.xlu0 %v940_v11, %s2118_s14  ;;  %1147 = vst.msk [vmem:[#allocation3 + $0x78] sm:$0x3] %vm843_vm3, %v1146_v12  ;;  %v1126_v13 = vld [vmem:[#allocation2 + $0x70] sm:$0x3]  ;;  %v1114_v39 = vld [vmem:[#allocation2 + $0x6c] sm:$0x3] }
 0x3c5   :  { %1127 = vst.msk [vmem:[#allocation3 + $0x70] sm:$0x3] %vm843_vm3, %v1126_v13  ;;  %v1128_v40 = vld [vmem:[#allocation2 + $0x72] sm:$0x3]  ;;  %v1120_v41 = vld [vmem:[#allocation2 + $0x6e] sm:$0x3] }
 0x3c6   :  { %v1134_v42 = vld [vmem:[#allocation2 + $0x74] sm:$0x3]  ;;  %v1148_v43 = vld [vmem:[#allocation2 + $0x7a] sm:$0x3]  ;;  %v1140_v44 = vld [vmem:[#allocation2 + $0x76] sm:$0x3] }
 0x3c8   :  { %962 = vrot.lane.b32.xlu1 %v960_v14, %s2118_s14  ;;  %970 = vrot.lane.b32.xlu0 %v968_v15, %s2117_s6 }
 0x3cc   :  { %936 = vrot.lane.b32.xlu1 %v934_v16, %s2109_s18  ;;  %976 = vrot.lane.b32.xlu0 %v974_v17, %s2109_s18 }
 0x3d0   :  { %990 = vrot.lane.b32.xlu1 %v988_v18, %s2117_s6  ;;  %982 = vrot.lane.b32.xlu0 %v980_v19, %s2118_s14 }
 0x3d4   :  { %996 = vrot.lane.b32.xlu1 %v994_v20, %s2109_s18  ;;  %1010 = vrot.lane.b32.xlu0 %v1008_v21, %s2117_s6 }
 0x3d8   :  { %1002 = vrot.lane.b32.xlu1 %v1000_v22, %s2118_s14  ;;  %1016 = vrot.lane.b32.xlu0 %v1014_v23, %s2109_s18 }
 0x3dc   :  { %1030 = vrot.lane.b32.xlu1 %v1028_v24, %s2117_s6  ;;  %1022 = vrot.lane.b32.xlu0 %v1020_v25, %s2118_s14 }
 0x3e0   :  { %1036 = vrot.lane.b32.xlu1 %v1034_v26, %s2109_s18  ;;  %1050 = vrot.lane.b32.xlu0 %v1048_v27, %s2117_s6 }
 0x3e4   :  { %1042 = vrot.lane.b32.xlu1 %v1040_v28, %s2118_s14  ;;  %1056 = vrot.lane.b32.xlu0 %v1054_v29, %s2109_s18 }
 0x3e8   :  { %1070 = vrot.lane.b32.xlu1 %v1068_v30, %s2117_s6  ;;  %1062 = vrot.lane.b32.xlu0 %v1060_v31, %s2118_s14 }
 0x3ec   :  { %1076 = vrot.lane.b32.xlu1 %v1074_v33, %s2109_s18  ;;  %1090 = vrot.lane.b32.xlu0 %v1088_v34, %s2117_s6 }
 0x3f0   :  { %1082 = vrot.lane.b32.xlu1 %v1080_v35, %s2118_s14  ;;  %1096 = vrot.lane.b32.xlu0 %v1094_v36, %s2109_s18 }
 0x3f4   :  { %1110 = vrot.lane.b32.xlu1 %v1108_v37, %s2117_s6  ;;  %1102 = vrot.lane.b32.xlu0 %v1100_v38, %s2118_s14 }
 0x3f8   :  { %1116 = vrot.lane.b32.xlu1 %v1114_v39, %s2109_s18  ;;  %1130 = vrot.lane.b32.xlu0 %v1128_v40, %s2117_s6 }
 0x3fc   :  { %1122 = vrot.lane.b32.xlu1 %v1120_v41, %s2118_s14  ;;  %1136 = vrot.lane.b32.xlu0 %v1134_v42, %s2109_s18 }
 0x400   :  { %1150 = vrot.lane.b32.xlu1 %v1148_v43, %s2117_s6  ;;  %1142 = vrot.lane.b32.xlu0 %v1140_v44, %s2118_s14 }
 0x41a   :  { %v877_v45 = vpop.permute.xlu0 %876  ;;  %v871_v46 = vpop.permute.xlu1 %870 }
 0x41b   :  { %873 = vst.msk [vmem:[#allocation3 + $0x8] sm:$0x3] %vm850_vm0, %v871_v46 }
 0x41c   :  { %879 = vst.msk [vmem:[#allocation3 + $0x8] sm:$0x3] %vm857_vm4, %v877_v45 }
 0x41e   :  { %v883_v47 = vpop.permute.xlu1 %882  ;;  %v848_v48 = vpop.permute.xlu0 %847 }
 0x41f   :  { %885 = vst.msk [vmem:[#allocation3 + $0x8] sm:$0x3] %vm864_vm5, %v883_v47 }
 0x420   :  { %851 = vst.msk [vmem:[#allocation3] sm:$0x3] %vm850_vm0, %v848_v48 }
 0x422   :  { %v855_v49 = vpop.permute.xlu1 %854  ;;  %v862_v50 = vpop.permute.xlu0 %861 }
 0x423   :  { %858 = vst.msk [vmem:[#allocation3] sm:$0x3] %vm857_vm4, %v855_v49 }
 0x424   :  { %865 = vst.msk [vmem:[#allocation3] sm:$0x3] %vm864_vm5, %v862_v50 }
 0x426   :  { %v917_v51 = vpop.permute.xlu0 %916  ;;  %v911_v52 = vpop.permute.xlu1 %910 }
 0x427   :  { %913 = vst.msk [vmem:[#allocation3 + $0x18] sm:$0x3] %vm850_vm0, %v911_v52 }
 0x428   :  { %919 = vst.msk [vmem:[#allocation3 + $0x18] sm:$0x3] %vm857_vm4, %v917_v51 }
 0x42a   :  { %v923_v53 = vpop.permute.xlu1 %922  ;;  %v891_v54 = vpop.permute.xlu0 %890 }
 0x42b   :  { %925 = vst.msk [vmem:[#allocation3 + $0x18] sm:$0x3] %vm864_vm5, %v923_v53 }
 0x42c   :  { %893 = vst.msk [vmem:[#allocation3 + $0x10] sm:$0x3] %vm850_vm0, %v891_v54 }
 0x42e   :  { %v897_v55 = vpop.permute.xlu1 %896  ;;  %v903_v56 = vpop.permute.xlu0 %902 }
 0x42f   :  { %899 = vst.msk [vmem:[#allocation3 + $0x10] sm:$0x3] %vm857_vm4, %v897_v55 }
 0x430   :  { %905 = vst.msk [vmem:[#allocation3 + $0x10] sm:$0x3] %vm864_vm5, %v903_v56 }
 0x432   :  { %v951_v57 = vpop.permute.xlu1 %950  ;;  %v931_v58 = vpop.permute.xlu0 %930 }
 0x433   :  { %953 = vst.msk [vmem:[#allocation3 + $0x28] sm:$0x3] %vm850_vm0, %v951_v57  ;;  %933 = vst.msk [vmem:[#allocation3 + $0x20] sm:$0x3] %vm850_vm0, %v931_v58 }
 0x436   :  { %v957_v59 = vpop.permute.xlu1 %956  ;;  %v943_v60 = vpop.permute.xlu0 %942 }
 0x437   :  { %959 = vst.msk [vmem:[#allocation3 + $0x28] sm:$0x3] %vm857_vm4, %v957_v59 }
 0x43a   :  { %v963_v61 = vpop.permute.xlu1 %962  ;;  %v971_v62 = vpop.permute.xlu0 %970 }
 0x43b   :  { %965 = vst.msk [vmem:[#allocation3 + $0x28] sm:$0x3] %vm864_vm5, %v963_v61 }
 0x43c   :  { %973 = vst.msk [vmem:[#allocation3 + $0x30] sm:$0x3] %vm850_vm0, %v971_v62 }
 0x43e   :  { %v937_v63 = vpop.permute.xlu1 %936  ;;  %v977_v0 = vpop.permute.xlu0 %976 }
 0x43f   :  { %939 = vst.msk [vmem:[#allocation3 + $0x20] sm:$0x3] %vm857_vm4, %v937_v63  ;;  %979 = vst.msk [vmem:[#allocation3 + $0x30] sm:$0x3] %vm857_vm4, %v977_v0 }
 0x440   :  { %945 = vst.msk [vmem:[#allocation3 + $0x20] sm:$0x3] %vm864_vm5, %v943_v60 }
 0x442   :  { %v991_v1 = vpop.permute.xlu1 %990  ;;  %v983_v2 = vpop.permute.xlu0 %982 }
 0x443   :  { %993 = vst.msk [vmem:[#allocation3 + $0x38] sm:$0x3] %vm850_vm0, %v991_v1 }
 0x444   :  { %985 = vst.msk [vmem:[#allocation3 + $0x30] sm:$0x3] %vm864_vm5, %v983_v2 }
 0x446   :  { %v997_v3 = vpop.permute.xlu1 %996  ;;  %v1011_v4 = vpop.permute.xlu0 %1010 }
 0x447   :  { %999 = vst.msk [vmem:[#allocation3 + $0x38] sm:$0x3] %vm857_vm4, %v997_v3 }
 0x448   :  { %1013 = vst.msk [vmem:[#allocation3 + $0x40] sm:$0x3] %vm850_vm0, %v1011_v4 }
 0x44a   :  { %v1003_v5 = vpop.permute.xlu1 %1002  ;;  %v1017_v6 = vpop.permute.xlu0 %1016 }
 0x44b   :  { %1005 = vst.msk [vmem:[#allocation3 + $0x38] sm:$0x3] %vm864_vm5, %v1003_v5 }
 0x44c   :  { %1019 = vst.msk [vmem:[#allocation3 + $0x40] sm:$0x3] %vm857_vm4, %v1017_v6 }
 0x44e   :  { %v1031_v7 = vpop.permute.xlu1 %1030  ;;  %v1023_v8 = vpop.permute.xlu0 %1022 }
 0x44f   :  { %1033 = vst.msk [vmem:[#allocation3 + $0x48] sm:$0x3] %vm850_vm0, %v1031_v7 }
 0x450   :  { %1025 = vst.msk [vmem:[#allocation3 + $0x40] sm:$0x3] %vm864_vm5, %v1023_v8 }
 0x452   :  { %v1037_v9 = vpop.permute.xlu1 %1036  ;;  %v1051_v10 = vpop.permute.xlu0 %1050 }
 0x453   :  { %1039 = vst.msk [vmem:[#allocation3 + $0x48] sm:$0x3] %vm857_vm4, %v1037_v9 }
 0x454   :  { %1053 = vst.msk [vmem:[#allocation3 + $0x50] sm:$0x3] %vm850_vm0, %v1051_v10 }
 0x456   :  { %v1043_v11 = vpop.permute.xlu1 %1042  ;;  %v1057_v12 = vpop.permute.xlu0 %1056 }
 0x457   :  { %1045 = vst.msk [vmem:[#allocation3 + $0x48] sm:$0x3] %vm864_vm5, %v1043_v11 }
 0x458   :  { %1059 = vst.msk [vmem:[#allocation3 + $0x50] sm:$0x3] %vm857_vm4, %v1057_v12 }
 0x45a   :  { %v1071_v13 = vpop.permute.xlu1 %1070  ;;  %v1063_v14 = vpop.permute.xlu0 %1062 }
 0x45b   :  { %1073 = vst.msk [vmem:[#allocation3 + $0x58] sm:$0x3] %vm850_vm0, %v1071_v13 }
 0x45c   :  { %1065 = vst.msk [vmem:[#allocation3 + $0x50] sm:$0x3] %vm864_vm5, %v1063_v14 }
 0x45e   :  { %v1077_v15 = vpop.permute.xlu1 %1076  ;;  %v1091_v16 = vpop.permute.xlu0 %1090 }
 0x45f   :  { %1079 = vst.msk [vmem:[#allocation3 + $0x58] sm:$0x3] %vm857_vm4, %v1077_v15 }
 0x460   :  { %1093 = vst.msk [vmem:[#allocation3 + $0x60] sm:$0x3] %vm850_vm0, %v1091_v16 }
 0x462   :  { %v1083_v17 = vpop.permute.xlu1 %1082  ;;  %v1097_v18 = vpop.permute.xlu0 %1096 }
 0x463   :  { %1085 = vst.msk [vmem:[#allocation3 + $0x58] sm:$0x3] %vm864_vm5, %v1083_v17 }
 0x464   :  { %1099 = vst.msk [vmem:[#allocation3 + $0x60] sm:$0x3] %vm857_vm4, %v1097_v18 }
 0x466   :  { %v1111_v19 = vpop.permute.xlu1 %1110  ;;  %v1103_v20 = vpop.permute.xlu0 %1102 }
 0x467   :  { %1113 = vst.msk [vmem:[#allocation3 + $0x68] sm:$0x3] %vm850_vm0, %v1111_v19 }
 0x468   :  { %1105 = vst.msk [vmem:[#allocation3 + $0x60] sm:$0x3] %vm864_vm5, %v1103_v20 }
 0x46a   :  { %v1117_v21 = vpop.permute.xlu1 %1116  ;;  %v1131_v22 = vpop.permute.xlu0 %1130 }
 0x46b   :  { %1119 = vst.msk [vmem:[#allocation3 + $0x68] sm:$0x3] %vm857_vm4, %v1117_v21 }
 0x46c   :  { %1133 = vst.msk [vmem:[#allocation3 + $0x70] sm:$0x3] %vm850_vm0, %v1131_v22 }
 0x46e   :  { %v1123_v23 = vpop.permute.xlu1 %1122  ;;  %v1137_v24 = vpop.permute.xlu0 %1136 }
 0x46f   :  { %1125 = vst.msk [vmem:[#allocation3 + $0x68] sm:$0x3] %vm864_vm5, %v1123_v23 }
 0x470   :  { %1139 = vst.msk [vmem:[#allocation3 + $0x70] sm:$0x3] %vm857_vm4, %v1137_v24 }
 0x472   :  { %v1151_v25 = vpop.permute.xlu1 %1150  ;;  %v1143_v26 = vpop.permute.xlu0 %1142 }
 0x473   :  { %1153 = vst.msk [vmem:[#allocation3 + $0x78] sm:$0x3] %vm850_vm0, %v1151_v25 }
 0x474   :  { %1145 = vst.msk [vmem:[#allocation3 + $0x70] sm:$0x3] %vm864_vm5, %v1143_v26 }
 0x475   :  { %2104 = dma.done.wait [#allocation5], 32768 }
 0x476   :  { %2105 = vsyncadd [#allocation5], 4294934528  ;;  %v1191_v27 = vld [vmem:[#allocation4 + $0x8] sm:$0xff]  ;;  %v1190_v29 = vld [vmem:[#allocation4] sm:$0xff] }
 0x477   :  { %v1319_v28 = vld [vmem:[#allocation4 + $0x408] sm:$0xff]  ;;  %1458 = vmatprep.subr.bf16.mxu1 %v1191_v27  ;;  %v1318_v30 = vld [vmem:[#allocation4 + $0x400] sm:$0xff]  ;;  %v1193_v31 = vld [vmem:[#allocation4 + $0x18] sm:$0xff] }
 0x478   :  { %1622 = vmatprep.subr.bf16.mxu0 %v1319_v28  ;;  %v1321_v33 = vld [vmem:[#allocation4 + $0x418] sm:$0xff]  ;;  %1459 = vmatpush1.bf16.msra.mxu1 %v1190_v29  ;;  %v1192_v34 = vld [vmem:[#allocation4 + $0x10] sm:$0xff]  ;;  %v1195_v36 = vld [vmem:[#allocation4 + $0x28] sm:$0xff] }
 0x479   :  { %1623 = vmatpush1.bf16.msra.mxu0 %v1318_v30  ;;  %1460 = vmatprep.subr.bf16.mxu1 %v1193_v31  ;;  %v1320_v35 = vld [vmem:[#allocation4 + $0x410] sm:$0xff]  ;;  %v1323_v37 = vld [vmem:[#allocation4 + $0x428] sm:$0xff]  ;;  %v1194_v38 = vld [vmem:[#allocation4 + $0x20] sm:$0xff] }
 0x47a   :  { %1624 = vmatprep.subr.bf16.mxu0 %v1321_v33  ;;  %v1322_v39 = vld [vmem:[#allocation4 + $0x420] sm:$0xff]  ;;  %v1197_v40 = vld [vmem:[#allocation4 + $0x38] sm:$0xff]  ;;  %v1196_v42 = vld [vmem:[#allocation4 + $0x30] sm:$0xff] }
 0x47b   :  { %v1325_v41 = vld [vmem:[#allocation4 + $0x438] sm:$0xff]  ;;  %v1324_v43 = vld [vmem:[#allocation4 + $0x430] sm:$0xff]  ;;  %v1199_v44 = vld [vmem:[#allocation4 + $0x48] sm:$0xff] }
 0x47c   :  { %1461 = vmatpush1.bf16.msra.mxu1 %v1192_v34  ;;  %v1327_v45 = vld [vmem:[#allocation4 + $0x448] sm:$0xff]  ;;  %v1198_v46 = vld [vmem:[#allocation4 + $0x40] sm:$0xff]  ;;  %v1201_v48 = vld [vmem:[#allocation4 + $0x58] sm:$0xff] }
 0x47d   :  { %1625 = vmatpush1.bf16.msra.mxu0 %v1320_v35  ;;  %1462 = vmatprep.subr.bf16.mxu1 %v1195_v36  ;;  %v1326_v47 = vld [vmem:[#allocation4 + $0x440] sm:$0xff]  ;;  %v1329_v49 = vld [vmem:[#allocation4 + $0x458] sm:$0xff]  ;;  %v1200_v50 = vld [vmem:[#allocation4 + $0x50] sm:$0xff] }
 0x47e   :  { %1626 = vmatprep.subr.bf16.mxu0 %v1323_v37  ;;  %v1328_v51 = vld [vmem:[#allocation4 + $0x450] sm:$0xff]  ;;  %v1203_v52 = vld [vmem:[#allocation4 + $0x68] sm:$0xff]  ;;  %v1202_v57 = vld [vmem:[#allocation4 + $0x60] sm:$0xff] }
 0x47f   :  { %v1331_v53 = vld [vmem:[#allocation4 + $0x468] sm:$0xff]  ;;  %v1330_v58 = vld [vmem:[#allocation4 + $0x460] sm:$0xff]  ;;  %v1205_v60 = vld [vmem:[#allocation4 + $0x78] sm:$0xff] }
 0x480   :  { %1463 = vmatpush1.bf16.msra.mxu1 %v1194_v38  ;;  %v1159_v54 = vld [vmem:[#allocation3 + $0x8] sm:$0xff]  ;;  %v1333_v61 = vld [vmem:[#allocation4 + $0x478] sm:$0xff]  ;;  %v1204_v62 = vld [vmem:[#allocation4 + $0x70] sm:$0xff] }
 0x481   :  { %1627 = vmatpush1.bf16.msra.mxu0 %v1322_v39  ;;  %1464 = vmatprep.subr.bf16.mxu1 %v1197_v40  ;;  %v1175_v55 = vpack.c.bf16 %v1159_v54, %v1159_v54  ;;  %v1167_v56 = vld [vmem:[#allocation3 + $0x48] sm:$0xff]  ;;  %v1332_v63 = vld [vmem:[#allocation4 + $0x470] sm:$0xff]  ;;  %v1206_v2 = vld [vmem:[#allocation4 + $0x80] sm:$0xff] }
 0x482   :  { %1628 = vmatprep.subr.bf16.mxu0 %v1325_v41  ;;  %v1183_v59 = vpack.c.bf16 %v1167_v56, %v1167_v56  ;;  %v1207_v0 = vld [vmem:[#allocation4 + $0x88] sm:$0xff]  ;;  %v1334_v3 = vld [vmem:[#allocation4 + $0x480] sm:$0xff]  ;;  %v1209_v4 = vld [vmem:[#allocation4 + $0x98] sm:$0xff] }
 0x483   :  { %1490 = vmatprep.mubr.bf16.mxu1 %v1175_v55  ;;  %v1335_v1 = vld [vmem:[#allocation4 + $0x488] sm:$0xff]  ;;  %v1337_v5 = vld [vmem:[#allocation4 + $0x498] sm:$0xff]  ;;  %v1208_v6 = vld [vmem:[#allocation4 + $0x90] sm:$0xff] }
 0x484   :  { %1465 = vmatpush1.bf16.msra.mxu1 %v1196_v42  ;;  %1654 = vmatprep.mubr.bf16.mxu0 %v1183_v59  ;;  %v1336_v7 = vld [vmem:[#allocation4 + $0x490] sm:$0xff]  ;;  %v1211_v8 = vld [vmem:[#allocation4 + $0xa8] sm:$0xff]  ;;  %v1210_v10 = vld [vmem:[#allocation4 + $0xa0] sm:$0xff] }
 0x485   :  { %1629 = vmatpush1.bf16.msra.mxu0 %v1324_v43  ;;  %1466 = vmatprep.subr.bf16.mxu1 %v1199_v44  ;;  %v1339_v9 = vld [vmem:[#allocation4 + $0x4a8] sm:$0xff]  ;;  %v1338_v11 = vld [vmem:[#allocation4 + $0x4a0] sm:$0xff]  ;;  %v1213_v12 = vld [vmem:[#allocation4 + $0xb8] sm:$0xff] }
 0x486   :  { %1630 = vmatprep.subr.bf16.mxu0 %v1327_v45  ;;  %v1341_v13 = vld [vmem:[#allocation4 + $0x4b8] sm:$0xff]  ;;  %v1212_v14 = vld [vmem:[#allocation4 + $0xb0] sm:$0xff]  ;;  %v1215_v16 = vld [vmem:[#allocation4 + $0xc8] sm:$0xff] }
 0x487   :  { %v1340_v15 = vld [vmem:[#allocation4 + $0x4b0] sm:$0xff]  ;;  %v1343_v17 = vld [vmem:[#allocation4 + $0x4c8] sm:$0xff]  ;;  %v1214_v18 = vld [vmem:[#allocation4 + $0xc0] sm:$0xff] }
 0x488   :  { %1467 = vmatpush1.bf16.msra.mxu1 %v1198_v46  ;;  %v1342_v19 = vld [vmem:[#allocation4 + $0x4c0] sm:$0xff]  ;;  %v1217_v20 = vld [vmem:[#allocation4 + $0xd8] sm:$0xff]  ;;  %v1216_v22 = vld [vmem:[#allocation4 + $0xd0] sm:$0xff] }
 0x489   :  { %1631 = vmatpush1.bf16.msra.mxu0 %v1326_v47  ;;  %1468 = vmatprep.subr.bf16.mxu1 %v1201_v48  ;;  %v1345_v21 = vld [vmem:[#allocation4 + $0x4d8] sm:$0xff]  ;;  %v1344_v23 = vld [vmem:[#allocation4 + $0x4d0] sm:$0xff]  ;;  %v1219_v24 = vld [vmem:[#allocation4 + $0xe8] sm:$0xff] }
 0x48a   :  { %1632 = vmatprep.subr.bf16.mxu0 %v1329_v49  ;;  %v1347_v25 = vld [vmem:[#allocation4 + $0x4e8] sm:$0xff]  ;;  %v1218_v26 = vld [vmem:[#allocation4 + $0xe0] sm:$0xff]  ;;  %v1221_v28 = vld [vmem:[#allocation4 + $0xf8] sm:$0xff] }
 0x48b   :  { %v1346_v27 = vld [vmem:[#allocation4 + $0x4e0] sm:$0xff]  ;;  %v1349_v29 = vld [vmem:[#allocation4 + $0x4f8] sm:$0xff]  ;;  %v1220_v33 = vld [vmem:[#allocation4 + $0xf0] sm:$0xff] }
 0x48c   :  { %1469 = vmatpush1.bf16.msra.mxu1 %v1200_v50  ;;  %v1158_v30 = vld [vmem:[#allocation3] sm:$0xff]  ;;  %v1348_v34 = vld [vmem:[#allocation4 + $0x4f0] sm:$0xff]  ;;  %v1223_v35 = vld [vmem:[#allocation4 + $0x108] sm:$0xff] }
 0x48d   :  { %1633 = vmatpush1.bf16.msra.mxu0 %v1328_v51  ;;  %1470 = vmatprep.subr.bf16.mxu1 %v1203_v52  ;;  %v1166_v31 = vld [vmem:[#allocation3 + $0x40] sm:$0xff]  ;;  %v1351_v36 = vld [vmem:[#allocation4 + $0x508] sm:$0xff]  ;;  %v1174_v37 = vpack.c.bf16 %v1158_v30, %v1158_v30  ;;  %v1161_v39 = vld [vmem:[#allocation3 + $0x18] sm:$0xff] }
 0x48e   :  { %1634 = vmatprep.subr.bf16.mxu0 %v1331_v53  ;;  %v1182_v38 = vpack.c.bf16 %v1166_v31, %v1166_v31  ;;  %v1169_v40 = vld [vmem:[#allocation3 + $0x58] sm:$0xff]  ;;  %v1222_v41 = vld [vmem:[#allocation4 + $0x100] sm:$0xff]  ;;  %v1177_v45 = vpack.c.bf16 %v1161_v39, %v1161_v39  ;;  %v1224_v47 = vld [vmem:[#allocation4 + $0x110] sm:$0xff] }
 0x48f   :  { %v1350_v42 = vld [vmem:[#allocation4 + $0x500] sm:$0xff]  ;;  %v1225_v43 = vld [vmem:[#allocation4 + $0x118] sm:$0xff]  ;;  %v1185_v46 = vpack.c.bf16 %v1169_v40, %v1169_v40  ;;  %v1352_v48 = vld [vmem:[#allocation4 + $0x510] sm:$0xff] }
 0x490   :  { %1471 = vmatpush1.bf16.msra.mxu1 %v1202_v57  ;;  %v1353_v44 = vld [vmem:[#allocation4 + $0x518] sm:$0xff]  ;;  %v1227_v49 = vld [vmem:[#allocation4 + $0x128] sm:$0xff]  ;;  %v1226_v51 = vld [vmem:[#allocation4 + $0x120] sm:$0xff] }
 0x491   :  { %1635 = vmatpush1.bf16.msra.mxu0 %v1330_v58  ;;  %1472 = vmatprep.subr.bf16.mxu1 %v1205_v60  ;;  %v1355_v50 = vld [vmem:[#allocation4 + $0x528] sm:$0xff]  ;;  %v1354_v52 = vld [vmem:[#allocation4 + $0x520] sm:$0xff]  ;;  %v1229_v53 = vld [vmem:[#allocation4 + $0x138] sm:$0xff] }
 0x492   :  { %1636 = vmatprep.subr.bf16.mxu0 %v1333_v61  ;;  %v1357_v54 = vld [vmem:[#allocation4 + $0x538] sm:$0xff]  ;;  %v1228_v55 = vld [vmem:[#allocation4 + $0x130] sm:$0xff]  ;;  %v1231_v57 = vld [vmem:[#allocation4 + $0x148] sm:$0xff] }
 0x493   :  { %v1356_v56 = vld [vmem:[#allocation4 + $0x530] sm:$0xff]  ;;  %v1359_v58 = vld [vmem:[#allocation4 + $0x548] sm:$0xff]  ;;  %v1230_v59 = vld [vmem:[#allocation4 + $0x140] sm:$0xff] }
 0x494   :  { %1473 = vmatpush1.bf16.msra.mxu1 %v1204_v62  ;;  %v1358_v60 = vld [vmem:[#allocation4 + $0x540] sm:$0xff]  ;;  %v1233_v61 = vld [vmem:[#allocation4 + $0x158] sm:$0xff]  ;;  %v1248_v31 = vld [vmem:[#allocation4 + $0x1d0] sm:$0xff] }
 0x495   :  { %1637 = vmatpush1.bf16.msra.mxu0 %v1332_v63  ;;  %1474 = vmatprep.subr.bf16.mxu1 %v1207_v0  ;;  %v1361_v62 = vld [vmem:[#allocation4 + $0x558] sm:$0xff]  ;;  %v1232_v63 = vld [vmem:[#allocation4 + $0x150] sm:$0xff] }
 0x496   :  { %1638 = vmatprep.subr.bf16.mxu0 %v1335_v1  ;;  %v1360_v0 = vld [vmem:[#allocation4 + $0x550] sm:$0xff]  ;;  %v1235_v1 = vld [vmem:[#allocation4 + $0x168] sm:$0xff]  ;;  %v1377_v30 = vld [vmem:[#allocation4 + $0x5d8] sm:$0xff] }
 0x497   :  { %v1381_v39 = vld [vmem:[#allocation4 + $0x5f8] sm:$0xff]  ;;  %v1160_v40 = vld [vmem:[#allocation3 + $0x10] sm:$0xff] }
 0x498   :  { %1475 = vmatpush1.bf16.msra.mxu1 %v1206_v2  ;;  %v1363_v2 = vld [vmem:[#allocation4 + $0x568] sm:$0xff] }
 0x499   :  { %1639 = vmatpush1.bf16.msra.mxu0 %v1334_v3  ;;  %1476 = vmatprep.subr.bf16.mxu1 %v1209_v4  ;;  %v1234_v3 = vld [vmem:[#allocation4 + $0x160] sm:$0xff] }
 0x49a   :  { %1640 = vmatprep.subr.bf16.mxu0 %v1337_v5  ;;  %v1362_v4 = vld [vmem:[#allocation4 + $0x560] sm:$0xff]  ;;  %v1237_v5 = vld [vmem:[#allocation4 + $0x178] sm:$0xff] }
 0x49c   :  { %1477 = vmatpush1.bf16.msra.mxu1 %v1208_v6  ;;  %v1365_v6 = vld [vmem:[#allocation4 + $0x578] sm:$0xff] }
 0x49d   :  { %1641 = vmatpush1.bf16.msra.mxu0 %v1336_v7  ;;  %1478 = vmatprep.subr.bf16.mxu1 %v1211_v8  ;;  %v1236_v7 = vld [vmem:[#allocation4 + $0x170] sm:$0xff] }
 0x49e   :  { %1642 = vmatprep.subr.bf16.mxu0 %v1339_v9  ;;  %v1364_v8 = vld [vmem:[#allocation4 + $0x570] sm:$0xff]  ;;  %v1239_v9 = vld [vmem:[#allocation4 + $0x188] sm:$0xff] }
 0x4a0   :  { %1479 = vmatpush1.bf16.msra.mxu1 %v1210_v10  ;;  %v1367_v10 = vld [vmem:[#allocation4 + $0x588] sm:$0xff] }
 0x4a1   :  { %1643 = vmatpush1.bf16.msra.mxu0 %v1338_v11  ;;  %1480 = vmatprep.subr.bf16.mxu1 %v1213_v12  ;;  %v1238_v11 = vld [vmem:[#allocation4 + $0x180] sm:$0xff] }
 0x4a2   :  { %1644 = vmatprep.subr.bf16.mxu0 %v1341_v13  ;;  %v1366_v12 = vld [vmem:[#allocation4 + $0x580] sm:$0xff]  ;;  %v1241_v13 = vld [vmem:[#allocation4 + $0x198] sm:$0xff] }
 0x4a4   :  { %1481 = vmatpush1.bf16.msra.mxu1 %v1212_v14  ;;  %v1369_v14 = vld [vmem:[#allocation4 + $0x598] sm:$0xff] }
 0x4a5   :  { %1645 = vmatpush1.bf16.msra.mxu0 %v1340_v15  ;;  %1482 = vmatprep.subr.bf16.mxu1 %v1215_v16  ;;  %v1240_v15 = vld [vmem:[#allocation4 + $0x190] sm:$0xff] }
 0x4a6   :  { %1646 = vmatprep.subr.bf16.mxu0 %v1343_v17  ;;  %v1368_v16 = vld [vmem:[#allocation4 + $0x590] sm:$0xff]  ;;  %v1243_v17 = vld [vmem:[#allocation4 + $0x1a8] sm:$0xff] }
 0x4a8   :  { %1483 = vmatpush1.bf16.msra.mxu1 %v1214_v18  ;;  %v1371_v18 = vld [vmem:[#allocation4 + $0x5a8] sm:$0xff] }
 0x4a9   :  { %1647 = vmatpush1.bf16.msra.mxu0 %v1342_v19  ;;  %1484 = vmatprep.subr.bf16.mxu1 %v1217_v20  ;;  %v1242_v19 = vld [vmem:[#allocation4 + $0x1a0] sm:$0xff] }
 0x4aa   :  { %1648 = vmatprep.subr.bf16.mxu0 %v1345_v21  ;;  %v1370_v20 = vld [vmem:[#allocation4 + $0x5a0] sm:$0xff]  ;;  %v1245_v21 = vld [vmem:[#allocation4 + $0x1b8] sm:$0xff] }
 0x4ac   :  { %1485 = vmatpush1.bf16.msra.mxu1 %v1216_v22  ;;  %v1373_v22 = vld [vmem:[#allocation4 + $0x5b8] sm:$0xff] }
 0x4ad   :  { %1649 = vmatpush1.bf16.msra.mxu0 %v1344_v23  ;;  %1486 = vmatprep.subr.bf16.mxu1 %v1219_v24  ;;  %v1244_v23 = vld [vmem:[#allocation4 + $0x1b0] sm:$0xff] }
 0x4ae   :  { %1650 = vmatprep.subr.bf16.mxu0 %v1347_v25  ;;  %v1372_v24 = vld [vmem:[#allocation4 + $0x5b0] sm:$0xff]  ;;  %v1247_v25 = vld [vmem:[#allocation4 + $0x1c8] sm:$0xff] }
 0x4b0   :  { %1487 = vmatpush1.bf16.msra.mxu1 %v1218_v26  ;;  %v1375_v26 = vld [vmem:[#allocation4 + $0x5c8] sm:$0xff] }
 0x4b1   :  { %1651 = vmatpush1.bf16.msra.mxu0 %v1346_v27  ;;  %1488 = vmatprep.subr.bf16.mxu1 %v1221_v28  ;;  %v1246_v27 = vld [vmem:[#allocation4 + $0x1c0] sm:$0xff] }
 0x4b2   :  { %1652 = vmatprep.subr.bf16.mxu0 %v1349_v29  ;;  %v1374_v28 = vld [vmem:[#allocation4 + $0x5c0] sm:$0xff]  ;;  %v1249_v29 = vld [vmem:[#allocation4 + $0x1d8] sm:$0xff] }
 0x4b4   :  { %1489 = vmatpush1.bf16.msra.mxu1 %v1220_v33  ;;  %v1376_v33 = vld [vmem:[#allocation4 + $0x5d0] sm:$0xff] }
 0x4b5   :  { %1653 = vmatpush1.bf16.msra.mxu0 %v1348_v34  ;;  %1499 = vmatprep.subr.bf16.mxu1 %v1223_v35  ;;  %v1251_v34 = vld [vmem:[#allocation4 + $0x1e8] sm:$0xff] }
 0x4b6   :  { %1663 = vmatprep.subr.bf16.mxu0 %v1351_v36  ;;  %v1379_v35 = vld [vmem:[#allocation4 + $0x5e8] sm:$0xff]  ;;  %v1250_v36 = vld [vmem:[#allocation4 + $0x1e0] sm:$0xff] }
 0x4b7   :  { %1491 = vmatmul.mubr.bf16.vlgmr.msra.gmra.mrb[32].mxu1 %v1174_v37  ;;  %v1378_v37 = vld [vmem:[#allocation4 + $0x5e0] sm:$0xff] }
 0x4b8   :  { %1655 = vmatmul.mubr.bf16.vlgmr.msra.gmra.mrb[32].mxu0 %v1182_v38  ;;  %1500 = vmatpush1.bf16.msra.mxu1 %v1222_v41  ;;  %v1253_v38 = vld [vmem:[#allocation4 + $0x1f8] sm:$0xff]  ;;  %v1168_v41 = vld [vmem:[#allocation3 + $0x50] sm:$0xff] }
 0x4b9   :  { %1664 = vmatpush1.bf16.msra.mxu0 %v1350_v42  ;;  %1501 = vmatprep.subr.bf16.mxu1 %v1225_v43  ;;  %v1252_v42 = vld [vmem:[#allocation4 + $0x1f0] sm:$0xff] }
 0x4ba   :  { %1665 = vmatprep.subr.bf16.mxu0 %v1353_v44  ;;  %1531 = vmatprep.mubr.bf16.mxu1 %v1177_v45  ;;  %v1380_v43 = vld [vmem:[#allocation4 + $0x5f0] sm:$0xff]  ;;  %v1255_v44 = vld [vmem:[#allocation4 + $0x208] sm:$0xff] }
 0x4bb   :  { %1695 = vmatprep.mubr.bf16.mxu0 %v1185_v46  ;;  %v1383_v45 = vld [vmem:[#allocation4 + $0x608] sm:$0xff]  ;;  %v1176_v46 = vpack.c.bf16 %v1160_v40, %v1160_v40  ;;  %v1409_v40 = vld [vmem:[#allocation4 + $0x6d8] sm:$0xff] }
 0x4bc   :  { %1502 = vmatpush1.bf16.msra.mxu1 %v1224_v47  ;;  %v1184_v47 = vpack.c.bf16 %v1168_v41, %v1168_v41  ;;  %v1280_v41 = vld [vmem:[#allocation4 + $0x2d0] sm:$0xff] }
 0x4bd   :  { %1666 = vmatpush1.bf16.msra.mxu0 %v1352_v48  ;;  %1503 = vmatprep.subr.bf16.mxu1 %v1227_v49  ;;  %v1163_v48 = vld [vmem:[#allocation3 + $0x28] sm:$0xff] }
 0x4be   :  { %1667 = vmatprep.subr.bf16.mxu0 %v1355_v50  ;;  %v1171_v49 = vld [vmem:[#allocation3 + $0x68] sm:$0xff]  ;;  %v1254_v50 = vld [vmem:[#allocation4 + $0x200] sm:$0xff] }
 0x4c0   :  { %1504 = vmatpush1.bf16.msra.mxu1 %v1226_v51  ;;  %v1382_v51 = vld [vmem:[#allocation4 + $0x600] sm:$0xff] }
 0x4c1   :  { %1668 = vmatpush1.bf16.msra.mxu0 %v1354_v52  ;;  %1505 = vmatprep.subr.bf16.mxu1 %v1229_v53  ;;  %v1257_v52 = vld [vmem:[#allocation4 + $0x218] sm:$0xff] }
 0x4c2   :  { %1669 = vmatprep.subr.bf16.mxu0 %v1357_v54  ;;  %v1385_v53 = vld [vmem:[#allocation4 + $0x618] sm:$0xff]  ;;  %v1179_v54 = vpack.c.bf16 %v1163_v48, %v1163_v48 }
 0x4c3   :  { %v1413_v48 = vld [vmem:[#allocation4 + $0x6f8] sm:$0xff] }
 0x4c4   :  { %1506 = vmatpush1.bf16.msra.mxu1 %v1228_v55  ;;  %v1187_v55 = vpack.c.bf16 %v1171_v49, %v1171_v49  ;;  %v1162_v49 = vld [vmem:[#allocation3 + $0x20] sm:$0xff] }
 0x4c5   :  { %1670 = vmatpush1.bf16.msra.mxu0 %v1356_v56  ;;  %1507 = vmatprep.subr.bf16.mxu1 %v1231_v57  ;;  %v1256_v56 = vld [vmem:[#allocation4 + $0x210] sm:$0xff] }
 0x4c6   :  { %1671 = vmatprep.subr.bf16.mxu0 %v1359_v58  ;;  %v1384_v57 = vld [vmem:[#allocation4 + $0x610] sm:$0xff]  ;;  %v1259_v58 = vld [vmem:[#allocation4 + $0x228] sm:$0xff] }
 0x4c8   :  { %1508 = vmatpush1.bf16.msra.mxu1 %v1230_v59  ;;  %v1387_v59 = vld [vmem:[#allocation4 + $0x628] sm:$0xff] }
 0x4c9   :  { %1672 = vmatpush1.bf16.msra.mxu0 %v1358_v60  ;;  %1509 = vmatprep.subr.bf16.mxu1 %v1233_v61  ;;  %v1258_v60 = vld [vmem:[#allocation4 + $0x220] sm:$0xff] }
 0x4ca   :  { %1673 = vmatprep.subr.bf16.mxu0 %v1361_v62  ;;  %v1386_v61 = vld [vmem:[#allocation4 + $0x620] sm:$0xff]  ;;  %v1261_v62 = vld [vmem:[#allocation4 + $0x238] sm:$0xff] }
 0x4cc   :  { %1510 = vmatpush1.bf16.msra.mxu1 %v1232_v63  ;;  %v1389_v63 = vld [vmem:[#allocation4 + $0x638] sm:$0xff] }
 0x4cd   :  { %1674 = vmatpush1.bf16.msra.mxu0 %v1360_v0  ;;  %1511 = vmatprep.subr.bf16.mxu1 %v1235_v1  ;;  %v1260_v0 = vld [vmem:[#allocation4 + $0x230] sm:$0xff] }
 0x4ce   :  { %1675 = vmatprep.subr.bf16.mxu0 %v1363_v2  ;;  %v1388_v1 = vld [vmem:[#allocation4 + $0x630] sm:$0xff]  ;;  %v1263_v2 = vld [vmem:[#allocation4 + $0x248] sm:$0xff] }
 0x4d0   :  { %1512 = vmatpush1.bf16.msra.mxu1 %v1234_v3  ;;  %v1391_v3 = vld [vmem:[#allocation4 + $0x648] sm:$0xff] }
 0x4d1   :  { %1676 = vmatpush1.bf16.msra.mxu0 %v1362_v4  ;;  %1513 = vmatprep.subr.bf16.mxu1 %v1237_v5  ;;  %v1262_v4 = vld [vmem:[#allocation4 + $0x240] sm:$0xff] }
 0x4d2   :  { %1677 = vmatprep.subr.bf16.mxu0 %v1365_v6  ;;  %v1390_v5 = vld [vmem:[#allocation4 + $0x640] sm:$0xff]  ;;  %v1265_v6 = vld [vmem:[#allocation4 + $0x258] sm:$0xff] }
 0x4d4   :  { %1514 = vmatpush1.bf16.msra.mxu1 %v1236_v7  ;;  %v1393_v7 = vld [vmem:[#allocation4 + $0x658] sm:$0xff] }
 0x4d5   :  { %1678 = vmatpush1.bf16.msra.mxu0 %v1364_v8  ;;  %1515 = vmatprep.subr.bf16.mxu1 %v1239_v9  ;;  %v1264_v8 = vld [vmem:[#allocation4 + $0x250] sm:$0xff] }
 0x4d6   :  { %1679 = vmatprep.subr.bf16.mxu0 %v1367_v10  ;;  %v1392_v9 = vld [vmem:[#allocation4 + $0x650] sm:$0xff]  ;;  %v1267_v10 = vld [vmem:[#allocation4 + $0x268] sm:$0xff] }
 0x4d8   :  { %1516 = vmatpush1.bf16.msra.mxu1 %v1238_v11  ;;  %v1395_v11 = vld [vmem:[#allocation4 + $0x668] sm:$0xff] }
 0x4d9   :  { %1680 = vmatpush1.bf16.msra.mxu0 %v1366_v12  ;;  %1517 = vmatprep.subr.bf16.mxu1 %v1241_v13  ;;  %v1266_v12 = vld [vmem:[#allocation4 + $0x260] sm:$0xff] }
 0x4da   :  { %1681 = vmatprep.subr.bf16.mxu0 %v1369_v14  ;;  %v1394_v13 = vld [vmem:[#allocation4 + $0x660] sm:$0xff]  ;;  %v1269_v14 = vld [vmem:[#allocation4 + $0x278] sm:$0xff] }
 0x4dc   :  { %1518 = vmatpush1.bf16.msra.mxu1 %v1240_v15  ;;  %v1397_v15 = vld [vmem:[#allocation4 + $0x678] sm:$0xff] }
 0x4dd   :  { %1682 = vmatpush1.bf16.msra.mxu0 %v1368_v16  ;;  %1519 = vmatprep.subr.bf16.mxu1 %v1243_v17  ;;  %v1268_v16 = vld [vmem:[#allocation4 + $0x270] sm:$0xff] }
 0x4de   :  { %1683 = vmatprep.subr.bf16.mxu0 %v1371_v18  ;;  %v1396_v17 = vld [vmem:[#allocation4 + $0x670] sm:$0xff]  ;;  %v1271_v18 = vld [vmem:[#allocation4 + $0x288] sm:$0xff] }
 0x4e0   :  { %1520 = vmatpush1.bf16.msra.mxu1 %v1242_v19  ;;  %v1399_v19 = vld [vmem:[#allocation4 + $0x688] sm:$0xff] }
 0x4e1   :  { %1684 = vmatpush1.bf16.msra.mxu0 %v1370_v20  ;;  %1521 = vmatprep.subr.bf16.mxu1 %v1245_v21  ;;  %v1270_v20 = vld [vmem:[#allocation4 + $0x280] sm:$0xff] }
 0x4e2   :  { %1685 = vmatprep.subr.bf16.mxu0 %v1373_v22  ;;  %v1398_v21 = vld [vmem:[#allocation4 + $0x680] sm:$0xff]  ;;  %v1273_v22 = vld [vmem:[#allocation4 + $0x298] sm:$0xff] }
 0x4e4   :  { %1522 = vmatpush1.bf16.msra.mxu1 %v1244_v23  ;;  %v1401_v23 = vld [vmem:[#allocation4 + $0x698] sm:$0xff] }
 0x4e5   :  { %1686 = vmatpush1.bf16.msra.mxu0 %v1372_v24  ;;  %1523 = vmatprep.subr.bf16.mxu1 %v1247_v25  ;;  %v1272_v24 = vld [vmem:[#allocation4 + $0x290] sm:$0xff] }
 0x4e6   :  { %1687 = vmatprep.subr.bf16.mxu0 %v1375_v26  ;;  %v1400_v25 = vld [vmem:[#allocation4 + $0x690] sm:$0xff]  ;;  %v1275_v26 = vld [vmem:[#allocation4 + $0x2a8] sm:$0xff] }
 0x4e8   :  { %1524 = vmatpush1.bf16.msra.mxu1 %v1246_v27  ;;  %v1403_v27 = vld [vmem:[#allocation4 + $0x6a8] sm:$0xff] }
 0x4e9   :  { %1688 = vmatpush1.bf16.msra.mxu0 %v1374_v28  ;;  %1525 = vmatprep.subr.bf16.mxu1 %v1249_v29  ;;  %v1274_v28 = vld [vmem:[#allocation4 + $0x2a0] sm:$0xff] }
 0x4ea   :  { %1689 = vmatprep.subr.bf16.mxu0 %v1377_v30  ;;  %v1402_v29 = vld [vmem:[#allocation4 + $0x6a0] sm:$0xff]  ;;  %v1277_v30 = vld [vmem:[#allocation4 + $0x2b8] sm:$0xff] }
 0x4ec   :  { %1526 = vmatpush1.bf16.msra.mxu1 %v1248_v31  ;;  %v1405_v31 = vld [vmem:[#allocation4 + $0x6b8] sm:$0xff] }
 0x4ed   :  { %1690 = vmatpush1.bf16.msra.mxu0 %v1376_v33  ;;  %1527 = vmatprep.subr.bf16.mxu1 %v1251_v34  ;;  %v1276_v33 = vld [vmem:[#allocation4 + $0x2b0] sm:$0xff] }
 0x4ee   :  { %1691 = vmatprep.subr.bf16.mxu0 %v1379_v35  ;;  %v1404_v34 = vld [vmem:[#allocation4 + $0x6b0] sm:$0xff]  ;;  %v1279_v35 = vld [vmem:[#allocation4 + $0x2c8] sm:$0xff] }
 0x4f0   :  { %1528 = vmatpush1.bf16.msra.mxu1 %v1250_v36  ;;  %v1407_v36 = vld [vmem:[#allocation4 + $0x6c8] sm:$0xff] }
 0x4f1   :  { %1692 = vmatpush1.bf16.msra.mxu0 %v1378_v37  ;;  %1529 = vmatprep.subr.bf16.mxu1 %v1253_v38  ;;  %v1278_v37 = vld [vmem:[#allocation4 + $0x2c0] sm:$0xff] }
 0x4f2   :  { %1693 = vmatprep.subr.bf16.mxu0 %v1381_v39  ;;  %v1406_v38 = vld [vmem:[#allocation4 + $0x6c0] sm:$0xff]  ;;  %v1281_v39 = vld [vmem:[#allocation4 + $0x2d8] sm:$0xff] }
 0x4f4   :  { %1530 = vmatpush1.bf16.msra.mxu1 %v1252_v42  ;;  %v1408_v42 = vld [vmem:[#allocation4 + $0x6d0] sm:$0xff] }
 0x4f5   :  { %1694 = vmatpush1.bf16.msra.mxu0 %v1380_v43  ;;  %1540 = vmatprep.subr.bf16.mxu1 %v1255_v44  ;;  %v1283_v43 = vld [vmem:[#allocation4 + $0x2e8] sm:$0xff] }
 0x4f6   :  { %1704 = vmatprep.subr.bf16.mxu0 %v1383_v45  ;;  %v1411_v44 = vld [vmem:[#allocation4 + $0x6e8] sm:$0xff]  ;;  %v1282_v45 = vld [vmem:[#allocation4 + $0x2e0] sm:$0xff] }
 0x4f7   :  { %1532 = vmatmul.mubr.bf16.vlgmr.msra.gmra.mrb[32].mxu1 %v1176_v46  ;;  %v1410_v46 = vld [vmem:[#allocation4 + $0x6e0] sm:$0xff] }
 0x4f8   :  { %1696 = vmatmul.mubr.bf16.vlgmr.msra.gmra.mrb[32].mxu0 %v1184_v47  ;;  %1541 = vmatpush1.bf16.msra.mxu1 %v1254_v50  ;;  %v1285_v47 = vld [vmem:[#allocation4 + $0x2f8] sm:$0xff]  ;;  %v1170_v50 = vld [vmem:[#allocation3 + $0x60] sm:$0xff] }
 0x4f9   :  { %1705 = vmatpush1.bf16.msra.mxu0 %v1382_v51  ;;  %1542 = vmatprep.subr.bf16.mxu1 %v1257_v52  ;;  %v1284_v51 = vld [vmem:[#allocation4 + $0x2f0] sm:$0xff] }
 0x4fa   :  { %1706 = vmatprep.subr.bf16.mxu0 %v1385_v53  ;;  %1572 = vmatprep.mubr.bf16.mxu1 %v1179_v54  ;;  %v1412_v52 = vld [vmem:[#allocation4 + $0x6f0] sm:$0xff]  ;;  %v1287_v53 = vld [vmem:[#allocation4 + $0x308] sm:$0xff] }
 0x4fb   :  { %1736 = vmatprep.mubr.bf16.mxu0 %v1187_v55  ;;  %v1415_v54 = vld [vmem:[#allocation4 + $0x708] sm:$0xff]  ;;  %v1178_v55 = vpack.c.bf16 %v1162_v49, %v1162_v49  ;;  %v1441_v49 = vld [vmem:[#allocation4 + $0x7d8] sm:$0xff] }
 0x4fc   :  { %1543 = vmatpush1.bf16.msra.mxu1 %v1256_v56  ;;  %v1186_v56 = vpack.c.bf16 %v1170_v50, %v1170_v50  ;;  %v1312_v50 = vld [vmem:[#allocation4 + $0x3d0] sm:$0xff] }
 0x4fd   :  { %1707 = vmatpush1.bf16.msra.mxu0 %v1384_v57  ;;  %1544 = vmatprep.subr.bf16.mxu1 %v1259_v58  ;;  %v1165_v57 = vld [vmem:[#allocation3 + $0x38] sm:$0xff] }
 0x4fe   :  { %1708 = vmatprep.subr.bf16.mxu0 %v1387_v59  ;;  %v1173_v58 = vld [vmem:[#allocation3 + $0x78] sm:$0xff]  ;;  %v1286_v59 = vld [vmem:[#allocation4 + $0x300] sm:$0xff] }
 0x500   :  { %1545 = vmatpush1.bf16.msra.mxu1 %v1258_v60  ;;  %v1414_v60 = vld [vmem:[#allocation4 + $0x700] sm:$0xff] }
 0x501   :  { %1709 = vmatpush1.bf16.msra.mxu0 %v1386_v61  ;;  %1546 = vmatprep.subr.bf16.mxu1 %v1261_v62  ;;  %v1289_v61 = vld [vmem:[#allocation4 + $0x318] sm:$0xff] }
 0x502   :  { %1710 = vmatprep.subr.bf16.mxu0 %v1389_v63  ;;  %v1417_v62 = vld [vmem:[#allocation4 + $0x718] sm:$0xff]  ;;  %v1181_v63 = vpack.c.bf16 %v1165_v57, %v1165_v57 }
 0x503   :  { %v1445_v57 = vld [vmem:[#allocation4 + $0x7f8] sm:$0xff] }
 0x504   :  { %1547 = vmatpush1.bf16.msra.mxu1 %v1260_v0  ;;  %v1189_v0 = vpack.c.bf16 %v1173_v58, %v1173_v58  ;;  %v1164_v58 = vld [vmem:[#allocation3 + $0x30] sm:$0xff] }
 0x505   :  { %1711 = vmatpush1.bf16.msra.mxu0 %v1388_v1  ;;  %1548 = vmatprep.subr.bf16.mxu1 %v1263_v2  ;;  %v1288_v1 = vld [vmem:[#allocation4 + $0x310] sm:$0xff] }
 0x506   :  { %1712 = vmatprep.subr.bf16.mxu0 %v1391_v3  ;;  %v1416_v2 = vld [vmem:[#allocation4 + $0x710] sm:$0xff]  ;;  %v1291_v3 = vld [vmem:[#allocation4 + $0x328] sm:$0xff] }
 0x508   :  { %1549 = vmatpush1.bf16.msra.mxu1 %v1262_v4  ;;  %v1419_v4 = vld [vmem:[#allocation4 + $0x728] sm:$0xff] }
 0x509   :  { %1713 = vmatpush1.bf16.msra.mxu0 %v1390_v5  ;;  %1550 = vmatprep.subr.bf16.mxu1 %v1265_v6  ;;  %v1290_v5 = vld [vmem:[#allocation4 + $0x320] sm:$0xff] }
 0x50a   :  { %1714 = vmatprep.subr.bf16.mxu0 %v1393_v7  ;;  %v1418_v6 = vld [vmem:[#allocation4 + $0x720] sm:$0xff]  ;;  %v1293_v7 = vld [vmem:[#allocation4 + $0x338] sm:$0xff] }
 0x50c   :  { %1551 = vmatpush1.bf16.msra.mxu1 %v1264_v8  ;;  %v1421_v8 = vld [vmem:[#allocation4 + $0x738] sm:$0xff] }
 0x50d   :  { %1715 = vmatpush1.bf16.msra.mxu0 %v1392_v9  ;;  %1552 = vmatprep.subr.bf16.mxu1 %v1267_v10  ;;  %v1292_v9 = vld [vmem:[#allocation4 + $0x330] sm:$0xff] }
 0x50e   :  { %1716 = vmatprep.subr.bf16.mxu0 %v1395_v11  ;;  %v1420_v10 = vld [vmem:[#allocation4 + $0x730] sm:$0xff]  ;;  %v1295_v11 = vld [vmem:[#allocation4 + $0x348] sm:$0xff] }
 0x510   :  { %1553 = vmatpush1.bf16.msra.mxu1 %v1266_v12  ;;  %v1423_v12 = vld [vmem:[#allocation4 + $0x748] sm:$0xff] }
 0x511   :  { %1717 = vmatpush1.bf16.msra.mxu0 %v1394_v13  ;;  %1554 = vmatprep.subr.bf16.mxu1 %v1269_v14  ;;  %v1294_v13 = vld [vmem:[#allocation4 + $0x340] sm:$0xff] }
 0x512   :  { %1718 = vmatprep.subr.bf16.mxu0 %v1397_v15  ;;  %v1422_v14 = vld [vmem:[#allocation4 + $0x740] sm:$0xff]  ;;  %v1297_v15 = vld [vmem:[#allocation4 + $0x358] sm:$0xff] }
 0x514   :  { %1555 = vmatpush1.bf16.msra.mxu1 %v1268_v16  ;;  %v1425_v16 = vld [vmem:[#allocation4 + $0x758] sm:$0xff] }
 0x515   :  { %1719 = vmatpush1.bf16.msra.mxu0 %v1396_v17  ;;  %1556 = vmatprep.subr.bf16.mxu1 %v1271_v18  ;;  %v1296_v17 = vld [vmem:[#allocation4 + $0x350] sm:$0xff] }
 0x516   :  { %1720 = vmatprep.subr.bf16.mxu0 %v1399_v19  ;;  %v1424_v18 = vld [vmem:[#allocation4 + $0x750] sm:$0xff]  ;;  %v1299_v19 = vld [vmem:[#allocation4 + $0x368] sm:$0xff] }
 0x518   :  { %1557 = vmatpush1.bf16.msra.mxu1 %v1270_v20  ;;  %v1427_v20 = vld [vmem:[#allocation4 + $0x768] sm:$0xff] }
 0x519   :  { %1721 = vmatpush1.bf16.msra.mxu0 %v1398_v21  ;;  %1558 = vmatprep.subr.bf16.mxu1 %v1273_v22  ;;  %v1298_v21 = vld [vmem:[#allocation4 + $0x360] sm:$0xff] }
 0x51a   :  { %1722 = vmatprep.subr.bf16.mxu0 %v1401_v23  ;;  %v1426_v22 = vld [vmem:[#allocation4 + $0x760] sm:$0xff]  ;;  %v1301_v23 = vld [vmem:[#allocation4 + $0x378] sm:$0xff] }
 0x51c   :  { %1559 = vmatpush1.bf16.msra.mxu1 %v1272_v24  ;;  %v1429_v24 = vld [vmem:[#allocation4 + $0x778] sm:$0xff] }
 0x51d   :  { %1723 = vmatpush1.bf16.msra.mxu0 %v1400_v25  ;;  %1560 = vmatprep.subr.bf16.mxu1 %v1275_v26  ;;  %v1300_v25 = vld [vmem:[#allocation4 + $0x370] sm:$0xff] }
 0x51e   :  { %1724 = vmatprep.subr.bf16.mxu0 %v1403_v27  ;;  %v1428_v26 = vld [vmem:[#allocation4 + $0x770] sm:$0xff]  ;;  %v1303_v27 = vld [vmem:[#allocation4 + $0x388] sm:$0xff] }
 0x520   :  { %1561 = vmatpush1.bf16.msra.mxu1 %v1274_v28  ;;  %v1431_v28 = vld [vmem:[#allocation4 + $0x788] sm:$0xff] }
 0x521   :  { %1725 = vmatpush1.bf16.msra.mxu0 %v1402_v29  ;;  %1562 = vmatprep.subr.bf16.mxu1 %v1277_v30  ;;  %v1302_v29 = vld [vmem:[#allocation4 + $0x380] sm:$0xff] }
 0x522   :  { %1726 = vmatprep.subr.bf16.mxu0 %v1405_v31  ;;  %v1430_v30 = vld [vmem:[#allocation4 + $0x780] sm:$0xff]  ;;  %v1305_v31 = vld [vmem:[#allocation4 + $0x398] sm:$0xff] }
 0x524   :  { %1563 = vmatpush1.bf16.msra.mxu1 %v1276_v33  ;;  %v1433_v33 = vld [vmem:[#allocation4 + $0x798] sm:$0xff] }
 0x525   :  { %1727 = vmatpush1.bf16.msra.mxu0 %v1404_v34  ;;  %1564 = vmatprep.subr.bf16.mxu1 %v1279_v35  ;;  %v1304_v34 = vld [vmem:[#allocation4 + $0x390] sm:$0xff] }
 0x526   :  { %1728 = vmatprep.subr.bf16.mxu0 %v1407_v36  ;;  %v1432_v35 = vld [vmem:[#allocation4 + $0x790] sm:$0xff]  ;;  %v1307_v36 = vld [vmem:[#allocation4 + $0x3a8] sm:$0xff] }
 0x528   :  { %1565 = vmatpush1.bf16.msra.mxu1 %v1278_v37  ;;  %v1435_v37 = vld [vmem:[#allocation4 + $0x7a8] sm:$0xff] }
 0x529   :  { %1729 = vmatpush1.bf16.msra.mxu0 %v1406_v38  ;;  %1566 = vmatprep.subr.bf16.mxu1 %v1281_v39  ;;  %v1306_v38 = vld [vmem:[#allocation4 + $0x3a0] sm:$0xff] }
 0x52a   :  { %1730 = vmatprep.subr.bf16.mxu0 %v1409_v40  ;;  %v1434_v39 = vld [vmem:[#allocation4 + $0x7a0] sm:$0xff]  ;;  %v1309_v40 = vld [vmem:[#allocation4 + $0x3b8] sm:$0xff] }
 0x52c   :  { %1567 = vmatpush1.bf16.msra.mxu1 %v1280_v41  ;;  %v1437_v41 = vld [vmem:[#allocation4 + $0x7b8] sm:$0xff] }
 0x52d   :  { %1731 = vmatpush1.bf16.msra.mxu0 %v1408_v42  ;;  %1568 = vmatprep.subr.bf16.mxu1 %v1283_v43  ;;  %v1308_v42 = vld [vmem:[#allocation4 + $0x3b0] sm:$0xff] }
 0x52e   :  { %1732 = vmatprep.subr.bf16.mxu0 %v1411_v44  ;;  %v1436_v43 = vld [vmem:[#allocation4 + $0x7b0] sm:$0xff]  ;;  %v1311_v44 = vld [vmem:[#allocation4 + $0x3c8] sm:$0xff] }
 0x530   :  { %1569 = vmatpush1.bf16.msra.mxu1 %v1282_v45  ;;  %v1439_v45 = vld [vmem:[#allocation4 + $0x7c8] sm:$0xff] }
 0x531   :  { %1733 = vmatpush1.bf16.msra.mxu0 %v1410_v46  ;;  %1570 = vmatprep.subr.bf16.mxu1 %v1285_v47  ;;  %v1310_v46 = vld [vmem:[#allocation4 + $0x3c0] sm:$0xff] }
 0x532   :  { %1734 = vmatprep.subr.bf16.mxu0 %v1413_v48  ;;  %v1438_v47 = vld [vmem:[#allocation4 + $0x7c0] sm:$0xff]  ;;  %v1313_v48 = vld [vmem:[#allocation4 + $0x3d8] sm:$0xff] }
 0x534   :  { %1571 = vmatpush1.bf16.msra.mxu1 %v1284_v51  ;;  %v1440_v51 = vld [vmem:[#allocation4 + $0x7d0] sm:$0xff] }
 0x535   :  { %1735 = vmatpush1.bf16.msra.mxu0 %v1412_v52  ;;  %1581 = vmatprep.subr.bf16.mxu1 %v1287_v53  ;;  %v1315_v52 = vld [vmem:[#allocation4 + $0x3e8] sm:$0xff] }
 0x536   :  { %1745 = vmatprep.subr.bf16.mxu0 %v1415_v54  ;;  %v1443_v53 = vld [vmem:[#allocation4 + $0x7e8] sm:$0xff]  ;;  %v1314_v54 = vld [vmem:[#allocation4 + $0x3e0] sm:$0xff] }
 0x537   :  { %1573 = vmatmul.mubr.bf16.vlgmr.msra.gmra.mrb[32].mxu1 %v1178_v55  ;;  %v1442_v55 = vld [vmem:[#allocation4 + $0x7e0] sm:$0xff] }
 0x538   :  { %1737 = vmatmul.mubr.bf16.vlgmr.msra.gmra.mrb[32].mxu0 %v1186_v56  ;;  %1582 = vmatpush1.bf16.msra.mxu1 %v1286_v59  ;;  %v1317_v56 = vld [vmem:[#allocation4 + $0x3f8] sm:$0xff]  ;;  %v1172_v59 = vld [vmem:[#allocation3 + $0x70] sm:$0xff] }
 0x539   :  { %1746 = vmatpush1.bf16.msra.mxu0 %v1414_v60  ;;  %1583 = vmatprep.subr.bf16.mxu1 %v1289_v61  ;;  %v1316_v60 = vld [vmem:[#allocation4 + $0x3f0] sm:$0xff] }
 0x53a   :  { %1747 = vmatprep.subr.bf16.mxu0 %v1417_v62  ;;  %1613 = vmatprep.mubr.bf16.mxu1 %v1181_v63  ;;  %v1444_v61 = vld [vmem:[#allocation4 + $0x7f0] sm:$0xff]  ;;  %v1180_v62 = vpack.c.bf16 %v1164_v58, %v1164_v58  ;;  %v1188_v63 = vpack.c.bf16 %v1172_v59, %v1172_v59 }
 0x53b   :  { %1777 = vmatprep.mubr.bf16.mxu0 %v1189_v0  ;;  %v1449_v0 = vshrl.u32 %v567_v32, 7 }
 0x53c   :  { %1584 = vmatpush1.bf16.msra.mxu1 %v1288_v1 }
 0x53d   :  { %1748 = vmatpush1.bf16.msra.mxu0 %v1416_v2  ;;  %1585 = vmatprep.subr.bf16.mxu1 %v1291_v3  ;;  %v1450_v1 = vsub.s32 0, %v1449_v0  ;;  %v1446_v2 = vld [vmem:[%s2501_s9] sm:$0x3]  ;;  %v1454_v3 = vsub.s32 1, %v1449_v0 }
 0x53e   :  { %1749 = vmatprep.subr.bf16.mxu0 %v1419_v4 }
 0x53f   :  { %v1451_v4 = vrot.slane %v1446_v2, %v1450_v1 }
 0x540   :  { %1586 = vmatpush1.bf16.msra.mxu1 %v1290_v5  ;;  %v1455_v5 = vrot.slane %v1446_v2, %v1454_v3 }
 0x541   :  { %1750 = vmatpush1.bf16.msra.mxu0 %v1418_v6  ;;  %1587 = vmatprep.subr.bf16.mxu1 %v1293_v7 }
 0x542   :  { %1751 = vmatprep.subr.bf16.mxu0 %v1421_v8 }
 0x544   :  { %1588 = vmatpush1.bf16.msra.mxu1 %v1292_v9 }
 0x545   :  { %1752 = vmatpush1.bf16.msra.mxu0 %v1420_v10  ;;  %1589 = vmatprep.subr.bf16.mxu1 %v1295_v11 }
 0x546   :  { %1753 = vmatprep.subr.bf16.mxu0 %v1423_v12 }
 0x548   :  { %1590 = vmatpush1.bf16.msra.mxu1 %v1294_v13 }
 0x549   :  { %1754 = vmatpush1.bf16.msra.mxu0 %v1422_v14  ;;  %1591 = vmatprep.subr.bf16.mxu1 %v1297_v15 }
 0x54a   :  { %1755 = vmatprep.subr.bf16.mxu0 %v1425_v16 }
 0x54c   :  { %1592 = vmatpush1.bf16.msra.mxu1 %v1296_v17 }
 0x54d   :  { %1756 = vmatpush1.bf16.msra.mxu0 %v1424_v18  ;;  %1593 = vmatprep.subr.bf16.mxu1 %v1299_v19 }
 0x54e   :  { %1757 = vmatprep.subr.bf16.mxu0 %v1427_v20 }
 0x550   :  { %1594 = vmatpush1.bf16.msra.mxu1 %v1298_v21 }
 0x551   :  { %1758 = vmatpush1.bf16.msra.mxu0 %v1426_v22  ;;  %1595 = vmatprep.subr.bf16.mxu1 %v1301_v23 }
 0x552   :  { %1759 = vmatprep.subr.bf16.mxu0 %v1429_v24 }
 0x554   :  { %1596 = vmatpush1.bf16.msra.mxu1 %v1300_v25 }
 0x555   :  { %1760 = vmatpush1.bf16.msra.mxu0 %v1428_v26  ;;  %1597 = vmatprep.subr.bf16.mxu1 %v1303_v27 }
 0x556   :  { %1761 = vmatprep.subr.bf16.mxu0 %v1431_v28 }
 0x558   :  { %1598 = vmatpush1.bf16.msra.mxu1 %v1302_v29 }
 0x559   :  { %1762 = vmatpush1.bf16.msra.mxu0 %v1430_v30  ;;  %1599 = vmatprep.subr.bf16.mxu1 %v1305_v31 }
 0x55a   :  { %1763 = vmatprep.subr.bf16.mxu0 %v1433_v33 }
 0x55c   :  { %1600 = vmatpush1.bf16.msra.mxu1 %v1304_v34 }
 0x55d   :  { %1764 = vmatpush1.bf16.msra.mxu0 %v1432_v35  ;;  %1601 = vmatprep.subr.bf16.mxu1 %v1307_v36 }
 0x55e   :  { %1765 = vmatprep.subr.bf16.mxu0 %v1435_v37 }
 0x560   :  { %1602 = vmatpush1.bf16.msra.mxu1 %v1306_v38 }
 0x561   :  { %1766 = vmatpush1.bf16.msra.mxu0 %v1434_v39  ;;  %1603 = vmatprep.subr.bf16.mxu1 %v1309_v40 }
 0x562   :  { %1767 = vmatprep.subr.bf16.mxu0 %v1437_v41 }
 0x564   :  { %1604 = vmatpush1.bf16.msra.mxu1 %v1308_v42 }
 0x565   :  { %1768 = vmatpush1.bf16.msra.mxu0 %v1436_v43  ;;  %1605 = vmatprep.subr.bf16.mxu1 %v1311_v44 }
 0x566   :  { %1769 = vmatprep.subr.bf16.mxu0 %v1439_v45 }
 0x568   :  { %1606 = vmatpush1.bf16.msra.mxu1 %v1310_v46 }
 0x569   :  { %1770 = vmatpush1.bf16.msra.mxu0 %v1438_v47  ;;  %1607 = vmatprep.subr.bf16.mxu1 %v1313_v48 }
 0x56a   :  { %1771 = vmatprep.subr.bf16.mxu0 %v1441_v49 }
 0x56c   :  { %1608 = vmatpush1.bf16.msra.mxu1 %v1312_v50 }
 0x56d   :  { %1772 = vmatpush1.bf16.msra.mxu0 %v1440_v51  ;;  %1609 = vmatprep.subr.bf16.mxu1 %v1315_v52 }
 0x56e   :  { %1773 = vmatprep.subr.bf16.mxu0 %v1443_v53 }
 0x570   :  { %1610 = vmatpush1.bf16.msra.mxu1 %v1314_v54 }
 0x571   :  { %1774 = vmatpush1.bf16.msra.mxu0 %v1442_v55  ;;  %1611 = vmatprep.subr.bf16.mxu1 %v1317_v56 }
 0x572   :  { %1775 = vmatprep.subr.bf16.mxu0 %v1445_v57 }
 0x574   :  { %1612 = vmatpush1.bf16.msra.mxu1 %v1316_v60 }
 0x575   :  { %1776 = vmatpush1.bf16.msra.mxu0 %v1444_v61 }
 0x577   :  { %1614 = vmatmul.mubr.bf16.vlgmr.msra.gmra.mrb[32].mxu1 %v1180_v62 }
 0x578   :  { %1778 = vmatmul.mubr.bf16.vlgmr.msra.gmra.mrb[32].mxu0 %v1188_v63 }
 0x64a   :  { %v1615_v6 = vpop.f32.mrb[32].mxu1 }
 0x64b   :  { %v1779_v7 = vpop.f32.mrb[32].mxu0  ;;  %v2056_v8 = vadd.f32 %v1615_v6, %v1451_v4  ;;  %v1617_v9 = vpop.f32.mrb[33].mxu1 }
 0x64c   :  { %v1781_v10 = vpop.f32.mrb[33].mxu0  ;;  %v2058_v11 = vadd.f32 %v1617_v9, %v1455_v5  ;;  %v1619_v12 = vpop.f32.mrb[34].mxu1 }
 0x64d   :  { %v1783_v13 = vpop.f32.mrb[34].mxu0  ;;  %v2057_v14 = vadd.f32 %v2056_v8, %v1779_v7  ;;  %v1620_v15 = vpop.f32.mrb[35].mxu1 }
 0x64e   :  { %v1784_v16 = vpop.f32.mrb[35].mxu0  ;;  %v2059_v32 = vadd.f32 %v2058_v11, %v1781_v10 }
 0x64f   :  { %1786 = vst [vmem:[%s2502_s10] sm:$0xff] %v2057_v14 }
 0x650   :  { %1787 = vst [vmem:[%s2502_s10 + $0x8] sm:$0xff] %v2059_v32 }
 0x651   :  { %1792 = vsyncmov [#allocation5] }
 0x654   :  { %s1793_s1 = vpop.sfrf %1792 }
 0x655   :  { %p1848_p0 = scmp.ne.s32.totalorder %s1793_s1, 0 }
 0x657   :  { %1797 = shalt.err (%p1848_p0)  }

</bundles_post_ra>
